<compile_context>
chip_gen: v7x
topology: tpu7x:2x2x1
jax: 0.10.0
libtpu: 0.0.40
codegen_flags: <defaults>
</compile_context>

<pallas_src>
import jax
import jax.numpy as jnp
import numpy as np
from jax import lax
from jax.experimental import pallas as pl
from jax.experimental.pallas import tpu as pltpu

NC = 80                                # classes (module default)
NO = NC + 5                            # 85 outputs per anchor
NA = 3                                 # anchors per level
NL = 3                                 # number of levels
NON = NA * NO                          # 255 fused (anchor, channel) columns
NOP = ((NON + 127) // 128) * 128       # 256: lane-dense padded width
TP = 128                               # pixel rows per grid step


def detect_kernel(lvl_ref, x_ref, w_ref, c_ref, mf_ref, raw_ref, dec_ref):
    """One pixel tile of one level, all anchors fused.

    lvl_ref : (T,)   int32 SMEM   scalar prefetch (consumed by index_maps)
    x_ref   : (TP, CH_PAD)        input pixels (channels zero-padded)
    w_ref   : (1, CH_PAD, NOP)    folded conv weight for this tile's level
    c_ref   : (1, 6, NOP)         per-column decode coefficients
                                  rows: [bias, lin, quad, offset, gx, gy]
    mf_ref  : (T, 3) f32 SMEM     per-tile [pix_base, nx, ny*nx]
    raw_ref : (TP, NOP)           raw head output (pre-sigmoid)  -> x[i]
    dec_ref : (TP, NOP)           decoded boxes                  -> z
    """
    del lvl_ref
    t = pl.program_id(0)
    pix_base = mf_ref[t, 0]
    nx = mf_ref[t, 1]
    nynx = mf_ref[t, 2]

    c = c_ref[0]                                            # (6, NOP)
    y = jnp.dot(x_ref[...], w_ref[0],
                preferred_element_type=jnp.float32) + c[0:1, :]
    raw_ref[...] = y
    s = jax.nn.sigmoid(y)

    # per-pixel (gx, gy) from the pixel index: no grid tensor input.
    tp = x_ref.shape[0]
    pix = lax.broadcasted_iota(jnp.int32, (tp, 1), 0).astype(jnp.float32)
    pix = pix + pix_base
    in_img = pix - jnp.floor((pix + 0.5) / nynx) * nynx
    gy = jnp.floor((in_img + 0.5) / nx)
    gx = in_img - gy * nx

    # full-width decode: sigmoid cols pass through (lin=1); xy cols become
    # (2s - 0.5 + g) * stride; wh cols become (2s)^2 * anchor — all folded
    # into the per-column coefficient rows.
    dec_ref[...] = (c[1:2, :] * s + c[2:3, :] * (s * s) + c[3:4, :]
                    + gx * c[4:5, :] + gy * c[5:6, :])


def iaux_detect(xs, params, anchors, strides):
    """IAuxDetect eval forward.

    xs        : list of NL NCHW feature maps (the main heads x[:nl])
    params[i] : (w (NA*NO, ch_i), b (NA*NO,), ia (ch_i,), im (NA*NO,))
    anchors   : (NL, NA, 2), strides: per-level stride
    Returns (cat(z, 1), [x_i raw]) matching the PyTorch module (eval).
    """
    nl = len(xs)
    ch_pad = ((max(int(x.shape[1]) for x in xs) + 7) // 8) * 8

    col = np.arange(NON)
    o = col % NO
    is_x, is_y = (o == 0), (o == 1)
    is_w, is_h = (o == 2), (o == 3)

    x_slabs, w_blocks, c_blocks = [], [], []
    lvl_rows, mf_rows = [], []
    row_off, offsets, shapes = 0, [], []

    for i in range(nl):
        x = xs[i]
        w, b, ia, im = params[i]
        stride = float(strides[i])
        bs, ch, ny, nx = x.shape
        P = bs * ny * nx
        p_pad = ((P + TP - 1) // TP) * TP

        # pixels-major slab, channels & rows zero-padded
        xp = jnp.transpose(x, (0, 2, 3, 1)).reshape(P, ch).astype(jnp.float32)
        xp = jnp.pad(xp, ((0, p_pad - P), (0, ch_pad - ch)))
        x_slabs.append(xp)

        # fold ImplicitA / ImplicitM into the conv constants
        w = w.astype(jnp.float32)
        im_f = im.astype(jnp.float32)
        b_eff = (b.astype(jnp.float32)
                 + jnp.dot(w, ia.astype(jnp.float32),
                           precision=lax.Precision.HIGHEST)) * im_f
        w_eff = (w * im_f[:, None]).T                         # (ch, NON)
        w_blk = jnp.zeros((ch_pad, NOP), jnp.float32)
        w_blk = w_blk.at[:ch, :NON].set(w_eff)
        w_blocks.append(w_blk)

        # per-column decode coefficients (stride / 4*anchor folded in)
        lin = np.where(is_x | is_y, 2.0 * stride,
                       np.where(is_w | is_h, 0.0, 1.0)).astype(np.float32)
        off = np.where(is_x | is_y, -0.5 * stride, 0.0).astype(np.float32)
        gxc = np.where(is_x, stride, 0.0).astype(np.float32)
        gyc = np.where(is_y, stride, 0.0).astype(np.float32)
        wcols = np.arange(NA) * NO + 2
        hcols = np.arange(NA) * NO + 3
        quad = jnp.zeros((NON,), jnp.float32)
        quad = quad.at[wcols].set(4.0 * anchors[i, :, 0])
        quad = quad.at[hcols].set(4.0 * anchors[i, :, 1])
        coef = jnp.zeros((6, NOP), jnp.float32)
        coef = coef.at[0, :NON].set(b_eff)
        coef = coef.at[1, :NON].set(jnp.asarray(lin))
        coef = coef.at[2, :NON].set(quad)
        coef = coef.at[3, :NON].set(jnp.asarray(off))
        coef = coef.at[4, :NON].set(jnp.asarray(gxc))
        coef = coef.at[5, :NON].set(jnp.asarray(gyc))
        c_blocks.append(coef)

        # per-tile scalars
        for tblk in range(p_pad // TP):
            lvl_rows.append(i)
            mf_rows.append([float(tblk * TP), float(nx), float(ny * nx)])

        offsets.append(row_off)
        shapes.append((bs, ny, nx, P))
        row_off += p_pad

    x_all = jnp.concatenate(x_slabs, axis=0)               # (P_tot, ch_pad)
    w_all = jnp.stack(w_blocks, axis=0)                    # (NL, ch_pad, NOP)
    c_all = jnp.stack(c_blocks, axis=0)                    # (NL, 6, NOP)
    lvl_ids = jnp.asarray(np.asarray(lvl_rows, np.int32))  # (T,)
    metaf = jnp.asarray(np.asarray(mf_rows, np.float32))   # (T, 3)
    T = int(lvl_ids.shape[0])
    P_tot = row_off

    grid_spec = pltpu.PrefetchScalarGridSpec(
        num_scalar_prefetch=1,
        grid=(T,),
        in_specs=[
            pl.BlockSpec((TP, ch_pad), lambda t, lvl: (t, 0)),
            pl.BlockSpec((1, ch_pad, NOP), lambda t, lvl: (lvl[t], 0, 0)),
            pl.BlockSpec((1, 6, NOP), lambda t, lvl: (lvl[t], 0, 0)),
            pl.BlockSpec(memory_space=pltpu.MemorySpace.SMEM),
        ],
        out_specs=[
            pl.BlockSpec((TP, NOP), lambda t, lvl: (t, 0)),
            pl.BlockSpec((TP, NOP), lambda t, lvl: (t, 0)),
        ],
    )
    raw_all, dec_all = pl.pallas_call(
        detect_kernel,
        out_shape=(jax.ShapeDtypeStruct((P_tot, NOP), jnp.float32),
                   jax.ShapeDtypeStruct((P_tot, NOP), jnp.float32)),
        grid_spec=grid_spec,
        compiler_params=pltpu.CompilerParams(
            dimension_semantics=("parallel",)),
    )(lvl_ids, x_all, w_all, c_all, metaf)

    zs, x_outs = [], []
    for i in range(nl):
        bs, ny, nx, P = shapes[i]
        off = offsets[i]
        raw = raw_all[off:off + P, :NON]
        dec = dec_all[off:off + P, :NON]
        raw = raw.reshape(bs, ny, nx, NA, NO).transpose(0, 3, 1, 2, 4)
        dec = dec.reshape(bs, ny, nx, NA, NO).transpose(0, 3, 1, 2, 4)
        x_outs.append(raw)                                  # (bs,na,ny,nx,no)
        zs.append(dec.reshape(bs, NA * ny * nx, NO))
    return jnp.concatenate(zs, axis=1), x_outs


# ------------------------- pure-JAX reference -------------------------------
def ref_level(x_nchw, w, b, ia, im, anchors_l, stride):
    bs, ch, ny, nx = x_nchw.shape
    t = x_nchw + ia.reshape(1, ch, 1, 1)
    y = jnp.einsum("bchw,oc->bohw", t, w, precision=lax.Precision.HIGHEST)
    y = (y + b.reshape(1, -1, 1, 1)) * im.reshape(1, -1, 1, 1)
    y = y.reshape(bs, NA, NO, ny, nx).transpose(0, 1, 3, 4, 2)  # raw x[i]
    sig = jax.nn.sigmoid(y)
    xv, yv = jnp.meshgrid(jnp.arange(nx, dtype=jnp.float32),
                          jnp.arange(ny, dtype=jnp.float32), indexing="xy")
    g = jnp.stack([xv, yv], axis=-1).reshape(1, 1, ny, nx, 2)
    sig = sig.at[..., 0:2].set((sig[..., 0:2] * 2.0 - 0.5 + g) * stride)
    sig = sig.at[..., 2:4].set((sig[..., 2:4] * 2.0) ** 2 *
                               anchors_l.reshape(1, NA, 1, 1, 2))
    return sig.reshape(bs, -1, NO), y


# ------------------------------- main ----------------------------------------
if __name__ == "__main__":
    key = jax.random.PRNGKey(0)
    bs = 2
    ch = (16, 32, 64)
    spatial = (16, 8, 4)
    strides = (8.0, 16.0, 32.0)
    anchors = jnp.asarray(
        [[12, 16, 19, 36, 40, 28],
         [36, 75, 76, 55, 72, 146],
         [142, 110, 192, 243, 459, 401]], dtype=jnp.float32).reshape(NL, NA, 2)

    xs, params = [], []
    for i in range(NL):
        key, kx, kw, kb, kia, kim = jax.random.split(key, 6)
        xs.append(jax.random.normal(kx, (bs, ch[i], spatial[i], spatial[i]),
                                    dtype=jnp.float32))
        w = 0.05 * jax.random.normal(kw, (NA * NO, ch[i]), dtype=jnp.float32)
        b = 0.05 * jax.random.normal(kb, (NA * NO,), dtype=jnp.float32)
        ia = 0.02 * jax.random.normal(kia, (ch[i],), dtype=jnp.float32)
        im = 1.0 + 0.02 * jax.random.normal(kim, (NA * NO,), dtype=jnp.float32)
        params.append((w, b, ia, im))

    z, x_list = iaux_detect(xs, params, anchors, strides)
    jax.block_until_ready(z)
    for x_i in x_list:
        jax.block_until_ready(x_i)

    # verify against pure-JAX reference (both z and the raw x[i] outputs)
    z_refs = []
    for i in range(NL):
        w, b, ia, im = params[i]
        z_ref_i, x_raw_ref_i = ref_level(xs[i], w, b, ia, im, anchors[i],
                                         strides[i])
        z_refs.append(z_ref_i)
        np.testing.assert_allclose(np.asarray(x_list[i]),
                                   np.asarray(x_raw_ref_i),
                                   rtol=2e-3, atol=2e-3)
    z_ref = jnp.concatenate(z_refs, axis=1)
    np.testing.assert_allclose(np.asarray(z), np.asarray(z_ref),
                               rtol=2e-3, atol=2e-3)

    print("KERNEL_OK")
</pallas_src>

<mosaic_0001>
module attributes {stable_mosaic.version = 11 : i64} {
  func.func @detect_kernel(%arg0: i32, %arg1: memref<6xi32, #tpu.memory_space<smem>>, %arg2: memref<128x64xf32, #tpu.memory_space<vmem>>, %arg3: memref<1x64x256xf32, #tpu.memory_space<vmem>>, %arg4: memref<1x6x256xf32, #tpu.memory_space<vmem>>, %arg5: memref<6x3xf32, #tpu.memory_space<smem>>, %arg6: memref<128x256xf32, #tpu.memory_space<vmem>>, %arg7: memref<128x256xf32, #tpu.memory_space<vmem>>) attributes {dimension_semantics = [#tpu.dimension_semantics<parallel>], iteration_bounds = array<i64: 6>, scalar_prefetch = 1 : i64, scratch_operands = 0 : i64, tpu.core_type = #tpu.core_type<tc>, window_params = [{transform_indices = @transform_0, window_bounds = array<i64: 128, 64>}, {transform_indices = @transform_1, window_bounds = array<i64: 1, 64, 256>}, {transform_indices = @transform_2, window_bounds = array<i64: 1, 6, 256>}, {transform_indices = @transform_3, window_bounds = array<i64: 6, 3>}, {transform_indices = @transform_4, window_bounds = array<i64: 128, 256>}, {transform_indices = @transform_5, window_bounds = array<i64: 128, 256>}]} {
    %0 = arith.index_cast %arg0 : i32 to index
    %c0 = arith.constant 0 : index
    %1 = memref.load %arg5[%0, %c0] : memref<6x3xf32, #tpu.memory_space<smem>>
    %2 = arith.index_cast %arg0 : i32 to index
    %c1 = arith.constant 1 : index
    %3 = memref.load %arg5[%2, %c1] : memref<6x3xf32, #tpu.memory_space<smem>>
    %4 = arith.index_cast %arg0 : i32 to index
    %c2 = arith.constant 2 : index
    %5 = memref.load %arg5[%4, %c2] : memref<6x3xf32, #tpu.memory_space<smem>>
    %c0_0 = arith.constant 0 : index
    %c0_1 = arith.constant 0 : index
    %c0_2 = arith.constant 0 : index
    %6 = vector.load %arg4[%c0_0, %c0_1, %c0_2] : memref<1x6x256xf32, #tpu.memory_space<vmem>>, vector<1x6x256xf32>
    %7 = vector.shape_cast %6 : vector<1x6x256xf32> to vector<6x256xf32>
    %c0_3 = arith.constant 0 : index
    %c0_4 = arith.constant 0 : index
    %8 = vector.load %arg2[%c0_3, %c0_4] : memref<128x64xf32, #tpu.memory_space<vmem>>, vector<128x64xf32>
    %c0_5 = arith.constant 0 : index
    %c0_6 = arith.constant 0 : index
    %c0_7 = arith.constant 0 : index
    %9 = vector.load %arg3[%c0_5, %c0_6, %c0_7] : memref<1x64x256xf32, #tpu.memory_space<vmem>>, vector<1x64x256xf32>
    %10 = vector.shape_cast %9 : vector<1x64x256xf32> to vector<64x256xf32>
    %cst = arith.constant dense<0.000000e+00> : vector<128x256xf32>
    %11 = tpu.matmul %8, %10, %cst {dimension_numbers = #tpu.dot_dimension_numbers<[1], [0], [0], [1], [0, 0, 1, 1], [], []>} : vector<128x64xf32>, vector<64x256xf32>, vector<128x256xf32> -> vector<128x256xf32>
    %12 = vector.extract_strided_slice %7 {offsets = [0, 0], sizes = [1, 256], strides = [1, 1]} : vector<6x256xf32> to vector<1x256xf32>
    %13 = vector.broadcast %12 : vector<1x256xf32> to vector<128x256xf32>
    %14 = arith.addf %11, %13 : vector<128x256xf32>
    %c0_8 = arith.constant 0 : index
    %c0_9 = arith.constant 0 : index
    %15 = vector.load %arg6[%c0_8, %c0_9] : memref<128x256xf32, #tpu.memory_space<vmem>>, vector<128x256xf32>
    tpu.vector_store %arg6[%c0_8, %c0_9], %14 {strides = array<i32>} : memref<128x256xf32, #tpu.memory_space<vmem>>, vector<128x256xf32>,
    %16 = arith.negf %14 : vector<128x256xf32>
    %17 = math.exp %16 : vector<128x256xf32>
    %cst_10 = arith.constant 1.000000e+00 : f32
    %18 = vector.broadcast %cst_10 : f32 to vector<128x256xf32>
    %19 = arith.addf %18, %17 : vector<128x256xf32>
    %20 = arith.divf %18, %19 : vector<128x256xf32>
    %21 = tpu.iota {dimensions = array<i32: 0>} : vector<128x1xi32>
    %22 = arith.sitofp %21 : vector<128x1xi32> to vector<128x1xf32>
    %23 = vector.broadcast %1 : f32 to vector<128x1xf32>
    %24 = arith.addf %22, %23 : vector<128x1xf32>
    %cst_11 = arith.constant 5.000000e-01 : f32
    %25 = vector.broadcast %cst_11 : f32 to vector<128x1xf32>
    %26 = arith.addf %24, %25 : vector<128x1xf32>
    %27 = vector.broadcast %5 : f32 to vector<128x1xf32>
    %28 = arith.divf %26, %27 : vector<128x1xf32>
    %29 = math.floor %28 : vector<128x1xf32>
    %30 = vector.broadcast %5 : f32 to vector<128x1xf32>
    %31 = arith.mulf %29, %30 : vector<128x1xf32>
    %32 = arith.subf %24, %31 : vector<128x1xf32>
    %cst_12 = arith.constant 5.000000e-01 : f32
    %33 = vector.broadcast %cst_12 : f32 to vector<128x1xf32>
    %34 = arith.addf %32, %33 : vector<128x1xf32>
    %35 = vector.broadcast %3 : f32 to vector<128x1xf32>
    %36 = arith.divf %34, %35 : vector<128x1xf32>
    %37 = math.floor %36 : vector<128x1xf32>
    %38 = vector.broadcast %3 : f32 to vector<128x1xf32>
    %39 = arith.mulf %37, %38 : vector<128x1xf32>
    %40 = arith.subf %32, %39 : vector<128x1xf32>
    %41 = vector.extract_strided_slice %7 {offsets = [1, 0], sizes = [1, 256], strides = [1, 1]} : vector<6x256xf32> to vector<1x256xf32>
    %42 = vector.broadcast %41 : vector<1x256xf32> to vector<128x256xf32>
    %43 = arith.mulf %42, %20 : vector<128x256xf32>
    %44 = vector.extract_strided_slice %7 {offsets = [2, 0], sizes = [1, 256], strides = [1, 1]} : vector<6x256xf32> to vector<1x256xf32>
    %45 = arith.mulf %20, %20 : vector<128x256xf32>
    %46 = vector.broadcast %44 : vector<1x256xf32> to vector<128x256xf32>
    %47 = arith.mulf %46, %45 : vector<128x256xf32>
    %48 = arith.addf %43, %47 : vector<128x256xf32>
    %49 = vector.extract_strided_slice %7 {offsets = [3, 0], sizes = [1, 256], strides = [1, 1]} : vector<6x256xf32> to vector<1x256xf32>
    %50 = vector.broadcast %49 : vector<1x256xf32> to vector<128x256xf32>
    %51 = arith.addf %48, %50 : vector<128x256xf32>
    %52 = vector.extract_strided_slice %7 {offsets = [4, 0], sizes = [1, 256], strides = [1, 1]} : vector<6x256xf32> to vector<1x256xf32>
    %53 = vector.broadcast %40 : vector<128x1xf32> to vector<128x256xf32>
    %54 = vector.broadcast %52 : vector<1x256xf32> to vector<128x256xf32>
    %55 = arith.mulf %53, %54 : vector<128x256xf32>
    %56 = arith.addf %51, %55 : vector<128x256xf32>
    %57 = vector.extract_strided_slice %7 {offsets = [5, 0], sizes = [1, 256], strides = [1, 1]} : vector<6x256xf32> to vector<1x256xf32>
    %58 = vector.broadcast %37 : vector<128x1xf32> to vector<128x256xf32>
    %59 = vector.broadcast %57 : vector<1x256xf32> to vector<128x256xf32>
    %60 = arith.mulf %58, %59 : vector<128x256xf32>
    %61 = arith.addf %56, %60 : vector<128x256xf32>
    %c0_13 = arith.constant 0 : index
    %c0_14 = arith.constant 0 : index
    %62 = vector.load %arg7[%c0_13, %c0_14] : memref<128x256xf32, #tpu.memory_space<vmem>>, vector<128x256xf32>
    tpu.vector_store %arg7[%c0_13, %c0_14], %61 {strides = array<i32>} : memref<128x256xf32, #tpu.memory_space<vmem>>, vector<128x256xf32>,
    return
  }
  func.func @transform_0(%arg0: i32, %arg1: memref<6xi32, #tpu.memory_space<smem>>) -> (i32, i32) {
    %c0_i32 = arith.constant 0 : i32
    %c0_i32_0 = arith.constant 0 : i32
    return %arg0, %c0_i32 : i32, i32
  }
  func.func @transform_1(%arg0: i32, %arg1: memref<6xi32, #tpu.memory_space<smem>>) -> (i32, i32, i32) {
    %0 = arith.index_cast %arg0 : i32 to index
    %1 = memref.load %arg1[%0] : memref<6xi32, #tpu.memory_space<smem>>
    %c0_i32 = arith.constant 0 : i32
    %c0_i32_0 = arith.constant 0 : i32
    %c0_i32_1 = arith.constant 0 : i32
    return %1, %c0_i32, %c0_i32_0 : i32, i32, i32
  }
  func.func @transform_2(%arg0: i32, %arg1: memref<6xi32, #tpu.memory_space<smem>>) -> (i32, i32, i32) {
    %0 = arith.index_cast %arg0 : i32 to index
    %1 = memref.load %arg1[%0] : memref<6xi32, #tpu.memory_space<smem>>
    %c0_i32 = arith.constant 0 : i32
    %c0_i32_0 = arith.constant 0 : i32
    %c0_i32_1 = arith.constant 0 : i32
    return %1, %c0_i32, %c0_i32_0 : i32, i32, i32
  }
  func.func @transform_3(%arg0: i32, %arg1: memref<6xi32, #tpu.memory_space<smem>>) -> (i32, i32) {
    %c0_i32 = arith.constant 0 : i32
    %c0_i32_0 = arith.constant 0 : i32
    %c0_i32_1 = arith.constant 0 : i32
    return %c0_i32, %c0_i32_0 : i32, i32
  }
  func.func @transform_4(%arg0: i32, %arg1: memref<6xi32, #tpu.memory_space<smem>>) -> (i32, i32) {
    %c0_i32 = arith.constant 0 : i32
    %c0_i32_0 = arith.constant 0 : i32
    return %arg0, %c0_i32 : i32, i32
  }
  func.func @transform_5(%arg0: i32, %arg1: memref<6xi32, #tpu.memory_space<smem>>) -> (i32, i32) {
    %c0_i32 = arith.constant 0 : i32
    %c0_i32_0 = arith.constant 0 : i32
    return %arg0, %c0_i32 : i32, i32
  }
}

</mosaic_0001>

<bundles_post_ra>
// kernel: tpu_custom_call.1
= control target key start
LH: loop header
LB: loop body
LE: loop exit
PB: predicated region body
PF: predicated region fallthrough
CT: control target
= control target key end

     0   :  { %s3136_s0 = inlined_call_operand.vmem [shape: s32[6], index: 0, kind: input, shape index: {}]   ;;  %s3137_s1 = inlined_call_operand.vmem [shape: f32[768,64], index: 1, kind: input, shape index: {}]   ;;  %s3138_s2 = inlined_call_operand.vmem [shape: f32[3,64,256], index: 2, kind: input, shape index: {}]   ;;  %s3139_s3 = inlined_call_operand.vmem [shape: f32[3,6,256], index: 3, kind: input, shape index: {}]   ;;  %s3140_s4 = inlined_call_operand.vmem [shape: f32[6,3], index: 4, kind: input, shape index: {}]   ;;  %s3141_s5 = inlined_call_operand.hbm [shape: f32[768,256], index: 5, kind: output, shape index: {0}]   ;;  %s3142_s6 = inlined_call_operand.hbm [shape: f32[768,256], index: 6, kind: output, shape index: {1}]  }
   0x1   :  { %s12_s23 = sshll.u32 %s3136_s0, 4  ;;  %s13_s23 = int_to_ptr.vmem [resolvable:$true] %s12_s23 }
   0x2   :  { %s1830_s24 = scalar_lea.vmem %s13_s23, 16  ;;  %p1835_p1 = scmp.lt.s32.totalorder %s13_s23, %s13_s23 }
   0x3   :  { %p1831_p0 = scmp.ne.s32.totalorder %s13_s23, %s1830_s24  ;;  %p1836_p2 = scmp.lt.s32.totalorder %s1830_s24, %s1830_s24 }
   0x5   :  { %p1837_p3 = por %p1836_p2, %p1835_p1 }
   0x7   :  { %p1838_p4 = pnand %p1837_p3, %p1831_p0 }
   0x9   :  { %1841 = shalt.err (!%p1838_p4)  }
   0xa   :  { %s1959_s25 = smov [#allocation3]  }
   0xb   :  { %15 = dma.vmem_to_smem %s13_s23, 16, %s1959_s25, [#allocation2] }
   0xc   :  { %1929 = dma.done.wait [#allocation2], 16 }
   0xd   :  { %1930 = vsyncadd [#allocation2], 4294967280 }
   0xe   :  { %17 = sfence }
   0xf   :  { %18 = vsyncpa [#allocation6], 0 }
  0x10   :  { %19 = vsyncpa [#allocation5], 0 }
  0x11   :  { %21 = vsyncpa [#allocation5 + $0x1], 0 }
  0x12   :  { %22 = vsyncpa [#allocation9], 0 }
  0x13   :  { %24 = vsyncpa [#allocation9 + $0x1], 0  ;;  %s2004_s26 = smov 0   ;;  %s2006_s0 = smov 0  }
  0x14   :  { %s2008_s27 = smov 0   ;;  %s2010_s28 = smov 0  }
  0x15 LB: > { %s2025_s29 = sadd.s32 4294967295, %s1957_s28   ;;  %s1536_s30 = sadd.s32 4294967294, %s1957_s28   ;;  %s1957_s28 = sphi %s2010_s28, %s3289_s28   ;;  %s1953_s27 = sphi %s2008_s27, %s3288_s27   ;;  %s1949_s0 = sphi %s2006_s0, %s3287_s0   ;;  %s1945_s26 = sphi %s2004_s26, %s3286_s26  }
  0x16   : > { %s2029_s7 = sadd.s32 1, %s1957_s28   ;;  %s140_s8 = sadd.s32 1, %s1953_s27 }
  0x17   : > { %s137_s9 = ssub.s32 %s1957_s28, %s2029_s7  ;;  %p150_p5 = scmp.ne.s32.totalorder %s1953_s27, %s1949_s0 }
  0x18   : > { %p138_p6 = scmp.eq.s32.totalorder %s137_s9, 0  ;;  %p151_p7 = scmp.eq.s32.totalorder %s2025_s29, 5 }
  0x19   : > { %p156_p8 = scmp.ne.s32.totalorder %s1949_s0, %s1945_s26  ;;  %p157_p9 = scmp.eq.s32.totalorder %s1536_s30, 5 }
  0x1a   : > { %s2040_s10 = scalar_select %p138_p6, %s1953_s27, %s140_s8  }
  0x1b   : > { %p2042_p10 = por %p151_p7, %p150_p5  ;;  %p2046_p11 = por %p157_p9, %p156_p8 }
  0x1c   : > { %p1537_p12 = scmp.ge.s32.totalorder %s1957_s28, 1  ;;  %p190_p13 = scmp.lt.s32.totalorder %s1957_s28, 7 }
  0x1d   : > { %p1658_p0 = scmp.eq.s32.totalorder %s2025_s29, 0  ;;  %s203_s16 = sshll.u32 %s3140_s4, 4  ;;  %s204_s16 = int_to_ptr.vmem [resolvable:$true] %s203_s16 }
  0x1e   : > { %p2053_p1 = pnand %p1537_p12, %p190_p13  ;;  %s1842_s17 = scalar_lea.vmem %s204_s16, 128 }
  0x1f   : > { %p1843_p4 = scmp.ne.s32.totalorder %s204_s16, %s1842_s17  ;;  %p1850_p8 = scmp.lt.s32.totalorder %s204_s16, %s204_s16 }
  0x20   : > { %p1647_p2 = pneg %p2053_p1  ;;  %p1851_p9 = scmp.lt.s32.totalorder %s1842_s17, %s1842_s17 }
  0x22   : > { %p1648_p3 = pnand %p1658_p0, %p1647_p2  ;;  %p1852_p12 = por %p1851_p9, %p1850_p8 }
  0x24   : > { %p1844_p5 = pneg %p1648_p3 }
  0x26   : > { %p1845_p6 = pnand %p1844_p5, %p1843_p4 }
  0x28   : > { %p1846_p7 = pneg %p1845_p6 }
  0x2a   : > { %p1853_p13 = pnand %p1852_p12, %p1846_p7 }
  0x2c   : > { %1856 = shalt.err (!%p1853_p13)
}
  0x2d   : > { %s1960_s18 = smov [#allocation4]   ;;  %245 = sbr.rel (%p2053_p1) target bundleno = 463 (0x1cf), region = 36 }
  0x2e   : > { %1650 = dma.vmem_to_smem (!%p1648_p3), %s204_s16, 128, %s1960_s18, [#allocation6]  }
  0x34   : > { %1932 = dma.done.wait (%p1658_p0), [#allocation6], 128  }
  0x35   : > { %1934 = vsyncadd (%p1658_p0), [#allocation6], 4294967168 }
  0x36   : > { %251 = sfence }
  0x37   : > { %s297_s19 = sld [smem:[#allocation3 + %s2025_s29]]  ;;  %v1961_v0 = vmov 0.0   ;;  %s1544_s24 = sshll.u32 %s2025_s29, 4  ;;  %vm361_vm0 = vcmask 523264   ;;  %v353_v41 = vlaneseq }
  0x38   : > { %474 = vmatprep.mubr.f32.mxu0 %v1961_v0  ;;  %522 = vmatprep.mubr.f32.mxu1 %v1961_v0  ;;  %p2088_p0 = scmp.lt.s32.totalorder %s1544_s24, 95  ;;  %s1550_s14 = sshll.u32 %s2025_s29, 7 }
  0x39   : > { %s317_s15 = sadd.s32 2, %s1550_s14  ;;  %s314_s17 = sld [smem:[#allocation4 + %s1550_s14]]  ;;  %v2155_v43 = vshrl.u32 %v353_v41, 7 }
  0x3a   : > { %s3293_s24 = smov (!%p2088_p0, %s1544_s24), 95  ;;  %s318_s16 = sld [smem:[#allocation4 + %s317_s15]] }
  0x3b   : > { %s1545_s30 = sshll.u32 %s3293_s24, 3  ;;  %v804_v44 = vadd.s32 64, %v2155_v43  ;;  %v812_v45 = vcvt.s32.f32 %v2155_v43  ;;  %s315_s18 = sadd.s32 1, %s1550_s14  ;;  %v797_v52 = vadd.s32 8, %v2155_v43  ;;  %v805_v53 = vadd.s32 72, %v2155_v43 }
  0x3c   : > { %s2104_s13 = scalar_lea.vmem %s3137_s1, %s1545_s30  ;;  %v798_v58 = vadd.s32 16, %v2155_v43  ;;  %v806_v60 = vadd.s32 80, %v2155_v43  ;;  %s2461_s25 = sand.u32 1, %s1949_s0  }
  0x3d   : > { %p298_p2 = scmp.lt.s32.totalorder %s297_s19, 2  ;;  %v321_v25 = vld [vmem:[%s2104_s13] sm:$0xff]  ;;  %v322_v27 = vld [vmem:[%s2104_s13 + $0x8] sm:$0xff]  ;;  %v323_v29 = vld [vmem:[%s2104_s13 + $0x10] sm:$0xff]  ;;  %v820_v47 = vcvt.s32.f32 %v804_v44  ;;  %v813_v56 = vcvt.s32.f32 %v797_v52  ;;  %v821_v57 = vcvt.s32.f32 %v805_v53  ;;  %s1542_s30 = sshll.u32 %s2461_s25, 8 }
  0x3e   : > { %v329_v26 = vld [vmem:[%s2104_s13 + $0x40] sm:$0xff]  ;;  %v330_v28 = vld [vmem:[%s2104_s13 + $0x48] sm:$0xff]  ;;  %v331_v30 = vld [vmem:[%s2104_s13 + $0x50] sm:$0xff]  ;;  %s2555_s8 = scalar_lea.vmem [#allocation7], %s1542_s30  ;;  %s2752_s9 = scalar_lea.vmem [#allocation8], %s1542_s30 }
  0x3f   : > { %s3291_s19 = smov (!%p298_p2, %s297_s19), 2  ;;  %v324_v31 = vld [vmem:[%s2104_s13 + $0x18] sm:$0xff]  ;;  %v325_v33 = vld [vmem:[%s2104_s13 + $0x20] sm:$0xff]  ;;  %v326_v35 = vld [vmem:[%s2104_s13 + $0x28] sm:$0xff]  ;;  %v2160_v46 = vstv %s314_s17  ;;  %s1389_s14 = sshll.u32 %s2555_s8, 4  ;;  %s2821_s14 = int_to_ptr.vmem [resolvable:$true] %s1389_s14 }
  0x40   : > { %s1609_s20 = sshll.u32 %s3291_s19, 7  ;;  %v332_v32 = vld [vmem:[%s2104_s13 + $0x58] sm:$0xff]  ;;  %v333_v34 = vld [vmem:[%s2104_s13 + $0x60] sm:$0xff]  ;;  %v334_v36 = vld [vmem:[%s2104_s13 + $0x68] sm:$0xff]  ;;  %v2153_v42 = vstv %s318_s16  ;;  %v829_v48 = vadd.f32 %v2160_v46, %v812_v45  ;;  %v837_v49 = vadd.f32 %v2160_v46, %v820_v47  ;;  %s316_s19 = sld [smem:[#allocation4 + %s315_s18]]  ;;  %v2176_v63 = vadd.f32 %v2160_v46, %v813_v56 }
  0x41   : > { %s2076_s23 = scalar_lea.vmem %s3138_s2, %s1609_s20  ;;  %v327_v37 = vld [vmem:[%s2104_s13 + $0x30] sm:$0xff]  ;;  %v328_v39 = vld [vmem:[%s2104_s13 + $0x38] sm:$0xff]  ;;  %3180 = vst [vmem:[#allocation14_spill] sm:$0xff] %v2153_v42  ;;  %1698 = vrcp.f32 %v2153_v42  ;;  %s304_s20 = sld [smem:[#allocation3 + %s2025_s29]]  ;;  %v1011_v56 = vsub.s32 1, %v2155_v43 }
  0x42   : > { %v338_v1 = vld [vmem:[%s2076_s23 + $0x8] sm:$0xff]  ;;  %v340_v2 = vld [vmem:[%s2076_s23 + $0x18] sm:$0xff]  ;;  %v337_v3 = vld [vmem:[%s2076_s23] sm:$0xff]  ;;  %v845_v50 = vadd.f32 0.5, %v829_v48  ;;  %v853_v54 = vadd.f32 0.5, %v837_v49  ;;  %s1370_s18 = scalar_lea.sflag [#allocation5], %s2461_s25 }
  0x43   : > { %v1615_v4 = vpack.c.bf16 %v340_v2, %v338_v1  ;;  %v339_v5 = vld [vmem:[%s2076_s23 + $0x10] sm:$0xff]  ;;  %v342_v6 = vld [vmem:[%s2076_s23 + $0x28] sm:$0xff]  ;;  %v344_v7 = vld [vmem:[%s2076_s23 + $0x38] sm:$0xff]  ;;  %v814_v1 = vcvt.s32.f32 %v798_v58  ;;  %v799_v2 = vadd.s32 24, %v2155_v43 }
  0x44   : > { %v1617_v8 = vpack.c.bf16 %v339_v5, %v337_v3  ;;  %v1619_v9 = vpack.c.bf16 %v344_v7, %v342_v6  ;;  %v341_v10 = vld [vmem:[%s2076_s23 + $0x20] sm:$0xff]  ;;  %v343_v11 = vld [vmem:[%s2076_s23 + $0x30] sm:$0xff]  ;;  %v346_v12 = vld [vmem:[%s2076_s23 + $0x48] sm:$0xff]  ;;  %v807_v3 = vadd.s32 88, %v2155_v43  ;;  %v822_v5 = vcvt.s32.f32 %v806_v60 }
  0x45   : > { %1616 = vmatprep.subr.bf16.mxu0 %v1615_v4  ;;  %1631 = vmatprep.subr.bf16.mxu1 %v1615_v4  ;;  %v348_v13 = vld [vmem:[%s2076_s23 + $0x58] sm:$0xff]  ;;  %v1621_v14 = vpack.c.bf16 %v343_v11, %v341_v10  ;;  %v345_v16 = vld [vmem:[%s2076_s23 + $0x40] sm:$0xff]  ;;  %v347_v17 = vld [vmem:[%s2076_s23 + $0x50] sm:$0xff]  ;;  %v800_v7 = vadd.s32 32, %v2155_v43  ;;  %v2190_v11 = vadd.f32 %v2160_v46, %v814_v1 }
  0x46   : > { %1618 = vmatpush1.bf16.msra.mxu0 %v1617_v8  ;;  %1635 = vmatpush1.bf16.msra.mxu1 %v1617_v8  ;;  %v1623_v15 = vpack.c.bf16 %v348_v13, %v346_v12  ;;  %v350_v18 = vld [vmem:[%s2076_s23 + $0x68] sm:$0xff]  ;;  %v352_v19 = vld [vmem:[%s2076_s23 + $0x78] sm:$0xff]  ;;  %v1625_v20 = vpack.c.bf16 %v347_v17, %v345_v16  ;;  %v349_v22 = vld [vmem:[%s2076_s23 + $0x60] sm:$0xff]  ;;  %v2173_v62 = vstv %s316_s19  ;;  %v808_v8 = vadd.s32 96, %v2155_v43  ;;  %s1857_s19 = scalar_lea.vmem %s2821_s14, 4096 }
  0x47   : > { %1620 = vmatprep.subr.bf16.mxu0 %v1619_v9  ;;  %1632 = vmatprep.subr.bf16.mxu1 %v1619_v9  ;;  %v1627_v21 = vpack.c.bf16 %v352_v19, %v350_v18  ;;  %v351_v23 = vld [vmem:[%s2076_s23 + $0x70] sm:$0xff]  ;;  %v336_v40 = vld [vmem:[%s2104_s13 + $0x78] sm:$0xff]  ;;  %3182 = vst [vmem:[#allocation16_spill] sm:$0xff] %v2173_v62  ;;  %p305_p1 = scmp.lt.s32.totalorder %s304_s20, 2  ;;  %1700 = vrcp.f32 %v2173_v62  ;;  %v846_v9 = vadd.f32 0.5, %v2176_v63  ;;  %v815_v12 = vcvt.s32.f32 %v799_v2  ;;  %p1858_p3 = scmp.ne.s32.totalorder %s2821_s14, %s1857_s19 }
  0x48   : > { %v1629_v24 = vpack.c.bf16 %v351_v23, %v349_v22  ;;  %v335_v38 = vld [vmem:[%s2104_s13 + $0x70] sm:$0xff]  ;;  %v823_v13 = vcvt.s32.f32 %v807_v3  ;;  %v816_v17 = vcvt.s32.f32 %v800_v7  ;;  %v824_v18 = vcvt.s32.f32 %v808_v8  ;;  %s1612_s13 = sshll.u32 %s2025_s29, 12 }
  0x49   : > { %s3295_s20 = smov (!%p305_p1, %s304_s20), 2  ;;  %v847_v22 = vadd.f32 0.5, %v2190_v11  ;;  %v2203_v23 = vadd.f32 %v2160_v46, %v815_v12  ;;  %s2809_s17 = scalar_lea.hbm %s3141_s5, %s1612_s13 }
  0x4a   : > { %1622 = vmatpush1.bf16.msra.mxu0 %v1621_v14  ;;  %1636 = vmatpush1.bf16.msra.mxu1 %v1621_v14  ;;  %s1610_s21 = sshll.u32 %s3295_s20, 4  ;;  %p1859_p4 = pnand %p1858_p3, %p2042_p10 }
  0x4b   : > { %1624 = vmatprep.subr.bf16.mxu0 %v1623_v15  ;;  %1633 = vmatprep.subr.bf16.mxu1 %v1623_v15  ;;  %v2164_v51 = vpop.eup %1698  ;;  %v2194_v15 = vadd.f32 %v2160_v46, %v822_v5  ;;  %s309_s24 = scalar_lea.vmem %s3139_s3, %s1610_s21  ;;  %s1962_s20 = smov [#allocation7]  }
  0x4c   : > { %3181 = vst [vmem:[#allocation15_spill] sm:$0xff] %v2164_v51  ;;  %v863_v55 = vmul.f32 %v2164_v51, %v845_v50  ;;  %v871_v59 = vmul.f32 %v2164_v51, %v853_v54  ;;  %v864_v19 = vmul.f32 %v2164_v51, %v846_v9  ;;  %v2233_v47 = vld [vmem:[%s309_s24] sm:$0x3f]  ;;  %p1860_p5 = pneg %p1859_p4  ;;  %s1861_s21 = sshll.u32 %s1962_s20, 4  ;;  %s1862_s21 = int_to_ptr.vmem [resolvable:$false] %s1861_s21 }
  0x4d   : > { %s1863_s22 = scalar_lea.vmem %s1862_s21, 8192  ;;  %p1864_p6 = scmp.lt.s32.totalorder %s2821_s14, %s1862_s21 }
  0x4e   : > { %1626 = vmatpush1.bf16.msra.mxu0 %v1625_v20  ;;  %1637 = vmatpush1.bf16.msra.mxu1 %v1625_v20  ;;  %v879_v61 = vfloor.f32 %v863_v55  ;;  %v887_v4 = vfloor.f32 %v871_v59  ;;  %v2245_v59 = vld [vmem:[%s309_s24 + $0x8] sm:$0x3f]  ;;  %p1865_p7 = scmp.lt.s32.totalorder %s1863_s22, %s1857_s19 }
  0x4f   : > { %1628 = vmatprep.subr.bf16.mxu0 %v1627_v21  ;;  %1634 = vmatprep.subr.bf16.mxu1 %v1627_v21  ;;  %v801_v21 = vadd.s32 40, %v2155_v43 }
  0x50   : > { %v895_v6 = vmul.f32 %v879_v61, %v2153_v42  ;;  %v903_v14 = vmul.f32 %v887_v4, %v2153_v42  ;;  %p1866_p8 = por %p1865_p7, %p1864_p6 }
  0x52   : > { %1630 = vmatpush1.bf16.msra.mxu0 %v1629_v24  ;;  %1638 = vmatpush1.bf16.msra.mxu1 %v1629_v24  ;;  %v2196_v16 = vsub.f32 %v829_v48, %v895_v6  ;;  %v2206_v24 = vadd.f32 %v2160_v46, %v823_v13  ;;  %v2269_v13 = vrot.slane %v2233_v47, %v1011_v56  ;;  %p1867_p9 = pnand %p1866_p8, %p1860_p5 }
  0x55   : > { %1551 = vmatmul.mubr.msk.f32.vlgmr.msra.gmra.mrb[0].mxu0 %vm361_vm0, %v321_v25  ;;  %1559 = vmatmul.mubr.msk.f32.vlgmr.msra.gmra.mrb[0].mxu1 %vm361_vm0, %v329_v26  ;;  %v2208_v25 = vsub.f32 %v837_v49, %v903_v14  ;;  %v855_v26 = vadd.f32 0.5, %v2194_v15 }
  0x56   : > { %480 = vmatprep.mubr.f32.mxu0 %v1961_v0  ;;  %528 = vmatprep.mubr.f32.mxu1 %v1961_v0 }
  0x59   : > { %1552 = vmatmul.mubr.msk.f32.gmra.mrb[2].mxu0 %vm361_vm0, %v322_v27  ;;  %1560 = vmatmul.mubr.msk.f32.gmra.mrb[2].mxu1 %vm361_vm0, %v330_v28  ;;  %v927_v27 = vadd.f32 0.5, %v2196_v16  ;;  %v2213_v28 = vadd.f32 %v2160_v46, %v816_v17 }
  0x5a   : > { %486 = vmatprep.mubr.f32.mxu0 %v1961_v0  ;;  %534 = vmatprep.mubr.f32.mxu1 %v1961_v0 }
  0x5b   : > { %v849_v44 = vadd.f32 0.5, %v2213_v28 }
  0x5d   : > { %1553 = vmatmul.mubr.msk.f32.gmra.mrb[4].mxu0 %vm361_vm0, %v323_v29  ;;  %1561 = vmatmul.mubr.msk.f32.gmra.mrb[4].mxu1 %vm361_vm0, %v331_v30  ;;  %v2216_v29 = vadd.f32 %v2160_v46, %v824_v18  ;;  %v2218_v30 = vpop.eup %1700  ;;  %v867_v2 = vmul.f32 %v2164_v51, %v849_v44  ;;  %v2280_v18 = vrot.slane %v2245_v59, %v1011_v56 }
  0x5e   : > { %492 = vmatprep.mubr.f32.mxu0 %v1961_v0  ;;  %540 = vmatprep.mubr.f32.mxu1 %v1961_v0  ;;  %3183 = vst [vmem:[#allocation17_spill] sm:$0xff] %v2218_v30  ;;  %v945_v41 = vmul.f32 %v2218_v30, %v927_v27 }
  0x5f   : > { %v857_v45 = vadd.f32 0.5, %v2216_v29 }
  0x60   : > { %v2250_v1 = vfloor.f32 %v945_v41  ;;  %v802_v41 = vadd.s32 48, %v2155_v43 }
  0x61   : > { %1554 = vmatmul.mubr.msk.f32.gmra.mrb[6].mxu0 %vm361_vm0, %v324_v31  ;;  %1562 = vmatmul.mubr.msk.f32.gmra.mrb[6].mxu1 %vm361_vm0, %v332_v32  ;;  %v880_v31 = vfloor.f32 %v864_v19  ;;  %v875_v3 = vmul.f32 %v2164_v51, %v857_v45  ;;  %v883_v19 = vfloor.f32 %v867_v2 }
  0x62   : > { %498 = vmatprep.mubr.f32.mxu0 %v1961_v0  ;;  %546 = vmatprep.mubr.f32.mxu1 %v1961_v0  ;;  %v977_v17 = vmul.f32 %v2250_v1, %v2173_v62  ;;  %v818_v2 = vcvt.s32.f32 %v802_v41 }
  0x63   : > { %v896_v48 = vmul.f32 %v880_v31, %v2153_v42  ;;  %v1195_v31 = vsub.s32 4, %v2155_v43 }
  0x65   : > { %1555 = vmatmul.mubr.msk.f32.gmra.mrb[8].mxu0 %vm361_vm0, %v325_v33  ;;  %1563 = vmatmul.mubr.msk.f32.gmra.mrb[8].mxu1 %vm361_vm0, %v333_v34  ;;  %v817_v33 = vcvt.s32.f32 %v801_v21  ;;  %v809_v34 = vadd.s32 104, %v2155_v43  ;;  %v2255_v4 = vsub.f32 %v2176_v63, %v896_v48 }
  0x66   : > { %504 = vmatprep.mubr.f32.mxu0 %v1961_v0  ;;  %552 = vmatprep.mubr.f32.mxu1 %v1961_v0 }
  0x67   : > { %v2238_v50 = vadd.f32 %v2160_v46, %v817_v33  ;;  %v825_v52 = vcvt.s32.f32 %v809_v34  ;;  %v928_v21 = vadd.f32 0.5, %v2255_v4 }
  0x69   : > { %1556 = vmatmul.mubr.msk.f32.gmra.mrb[10].mxu0 %vm361_vm0, %v326_v35  ;;  %1564 = vmatmul.mubr.msk.f32.gmra.mrb[10].mxu1 %vm361_vm0, %v334_v36  ;;  %v865_v35 = vmul.f32 %v2164_v51, %v847_v22  ;;  %v848_v36 = vadd.f32 0.5, %v2203_v23  ;;  %v850_v6 = vadd.f32 0.5, %v2238_v50  ;;  %v2262_v7 = vadd.f32 %v2160_v46, %v825_v52 }
  0x6a   : > { %510 = vmatprep.mubr.f32.mxu0 %v1961_v0  ;;  %558 = vmatprep.mubr.f32.mxu1 %v1961_v0  ;;  %v946_v44 = vmul.f32 %v2218_v30, %v928_v21  ;;  %v2309_v52 = vrot.slane %v2233_v47, %v1195_v31 }
  0x6b   : > { %v881_v53 = vfloor.f32 %v865_v35  ;;  %v866_v54 = vmul.f32 %v2164_v51, %v848_v36  ;;  %v858_v27 = vadd.f32 0.5, %v2262_v7  ;;  %v1155_v35 = vsub.s32 3, %v2155_v43 }
  0x6c   : > { %3184 = vst [vmem:[#allocation18_spill] sm:$0xff] %v2309_v52 }
  0x6d   : > { %1557 = vmatmul.mubr.msk.f32.gmra.mrb[12].mxu0 %vm361_vm0, %v327_v37  ;;  %1565 = vmatmul.mubr.msk.f32.gmra.mrb[12].mxu1 %vm361_vm0, %v335_v38  ;;  %v856_v37 = vadd.f32 0.5, %v2206_v24  ;;  %v935_v38 = vadd.f32 0.5, %v2208_v25  ;;  %v897_v9 = vmul.f32 %v881_v53, %v2153_v42 }
  0x6e   : > { %516 = vmatprep.mubr.f32.mxu0 %v1961_v0  ;;  %564 = vmatprep.mubr.f32.mxu1 %v1961_v0  ;;  %v2179_v0 = vadd.f32 %v2160_v46, %v821_v57  ;;  %v1083_v57 = vsub.s32 2, %v2155_v43 }
  0x6f   : > { %v874_v55 = vmul.f32 %v2164_v51, %v856_v37  ;;  %v953_v58 = vmul.f32 %v2218_v30, %v935_v38 }
  0x70   : > { %v854_v10 = vadd.f32 0.5, %v2179_v0  ;;  %v2272_v63 = vrot.slane %v2233_v47, %v1083_v57  ;;  %v2296_v37 = vrot.slane %v2245_v59, %v1083_v57  ;;  %v810_v57 = vadd.s32 112, %v2155_v43 }
  0x71   : > { %1558 = vmatmul.mubr.msk.f32.gmra.mrb[14].mxu0 %vm361_vm0, %v328_v39  ;;  %1566 = vmatmul.mubr.msk.f32.gmra.mrb[14].mxu1 %vm361_vm0, %v336_v40  ;;  %v873_v39 = vmul.f32 %v2164_v51, %v855_v26  ;;  %v355_v40 = vsub.s32 0, %v2155_v43  ;;  %v890_v12 = vfloor.f32 %v874_v55  ;;  %v868_v26 = vmul.f32 %v2164_v51, %v850_v6 }
  0x72   : > { %v872_v20 = vmul.f32 %v2164_v51, %v854_v10  ;;  %v882_v10 = vfloor.f32 %v866_v54  ;;  %v2319_v54 = vrot.slane %v2233_v47, %v1155_v35  ;;  %v1267_v55 = vsub.s32 5, %v2155_v43 }
  0x73   : > { %v889_v60 = vfloor.f32 %v873_v39  ;;  %v2248_v61 = vrot.slane %v2233_v47, %v355_v40  ;;  %v2265_v8 = vrot.slane %v2245_v59, %v355_v40  ;;  %v906_v34 = vmul.f32 %v890_v12, %v2153_v42 }
  0x74   : > { %v888_v32 = vfloor.f32 %v872_v20  ;;  %v891_v20 = vfloor.f32 %v875_v3  ;;  %v898_v33 = vmul.f32 %v882_v10, %v2153_v42  ;;  %v993_v39 = vsub.f32 %v2196_v16, %v977_v17 }
  0x75   : > { %v905_v14 = vmul.f32 %v889_v60, %v2153_v42  ;;  %v884_v48 = vfloor.f32 %v868_v26  ;;  %v2316_v53 = vsub.f32 %v2206_v24, %v906_v34  ;;  %v962_v24 = vfloor.f32 %v946_v44 }
  0x76   : > { %v904_v49 = vmul.f32 %v888_v32, %v2153_v42  ;;  %v2288_v32 = vsub.f32 %v2190_v11, %v897_v9  ;;  %v899_v11 = vmul.f32 %v883_v19, %v2153_v42  ;;  %v907_v40 = vmul.f32 %v891_v20, %v2153_v42 }
  0x77   : > { %v2299_v38 = vsub.f32 %v2194_v15, %v905_v14  ;;  %v2313_v16 = vsub.f32 %v2203_v23, %v898_v33  ;;  %v900_v6 = vmul.f32 %v884_v48, %v2153_v42  ;;  %v2335_v10 = vmul.f32 %v2309_v52, %v993_v39 }
  0x78   : > { %v2258_v5 = vsub.f32 %v2179_v0, %v904_v49  ;;  %v2274_v0 = vfloor.f32 %v953_v58  ;;  %v876_v49 = vmul.f32 %v2164_v51, %v858_v27  ;;  %v929_v15 = vadd.f32 0.5, %v2288_v32 }
  0x79   : > { %v937_v56 = vadd.f32 0.5, %v2299_v38  ;;  %v2326_v60 = vsub.f32 %v2213_v28, %v899_v11  ;;  %v2329_v23 = vsub.f32 %v2216_v29, %v907_v40  ;;  %v938_v28 = vadd.f32 0.5, %v2316_v53 }
  0x7a   : > { %v936_v22 = vadd.f32 0.5, %v2258_v5  ;;  %v985_v36 = vmul.f32 %v2274_v0, %v2173_v62  ;;  %v892_v9 = vfloor.f32 %v876_v49  ;;  %v947_v12 = vmul.f32 %v2218_v30, %v929_v15 }
  0x7b   : > { %v2341_v14 = vrot.slane %v2233_v47, %v1267_v55  ;;  %v2344_v29 = vrot.slane %v2245_v59, %v1155_v35  ;;  %v955_v17 = vmul.f32 %v2218_v30, %v937_v56  ;;  %v826_v19 = vcvt.s32.f32 %v810_v57 }
  0x7c   : > { %v954_v45 = vmul.f32 %v2218_v30, %v936_v22  ;;  %v1001_v58 = vsub.f32 %v2208_v25, %v985_v36  ;;  %v930_v25 = vadd.f32 0.5, %v2313_v16  ;;  %v2348_v20 = vrot.slane %v2245_v59, %v1195_v31 }
  0x7d   : > { %3185 = vst [vmem:[#allocation19_spill] sm:$0xff] %v2341_v14  ;;  %v931_v21 = vadd.f32 0.5, %v2326_v60  ;;  %v939_v22 = vadd.f32 0.5, %v2329_v23  ;;  %v2353_v26 = vadd.f32 %v2160_v46, %v818_v2  ;;  %v978_v27 = vmul.f32 %v962_v24, %v2173_v62 }
  0x7e   : > { %v2331_v3 = vfloor.f32 %v954_v45  ;;  %3186 = vst [vmem:[#allocation20_spill] sm:$0xff] %v2348_v20  ;;  %v2359_v33 = vsub.f32 %v2238_v50, %v900_v6  ;;  %v908_v34 = vmul.f32 %v892_v9, %v2153_v42  ;;  %v2363_v31 = vmul.f32 %v2309_v52, %v1001_v58 }
  0x7f   : > { %v963_v35 = vfloor.f32 %v947_v12  ;;  %v948_v36 = vmul.f32 %v2218_v30, %v930_v25  ;;  %v956_v11 = vmul.f32 %v2218_v30, %v938_v28  ;;  %v2369_v40 = vmul.f32 %v2341_v14, %v2250_v1 }
  0x80   : > { %v986_v47 = vmul.f32 %v2331_v3, %v2173_v62  ;;  %v2372_v41 = vrot.slane %v2245_v59, %v1267_v55  ;;  %v971_v44 = vfloor.f32 %v955_v17  ;;  %v2375_v50 = vadd.f32 %v2160_v46, %v826_v19 }
  0x81   : > { %v2378_v45 = vmul.f32 %v2348_v20, %v993_v39  ;;  %v949_v48 = vmul.f32 %v2218_v30, %v931_v21  ;;  %v957_v49 = vmul.f32 %v2218_v30, %v939_v22  ;;  %v851_v15 = vadd.f32 0.5, %v2353_v26 }
  0x82   : > { %3187 = vst [vmem:[#allocation21_spill] sm:$0xff] %v2372_v41  ;;  %v994_v56 = vsub.f32 %v2255_v4, %v978_v27  ;;  %v1002_v57 = vsub.f32 %v2258_v5, %v986_v47  ;;  %v932_v59 = vadd.f32 0.5, %v2359_v33  ;;  %v2387_v55 = vsub.f32 %v2262_v7, %v908_v34 }
  0x83   : > { %v2391_v2 = vmul.f32 %v2341_v14, %v2274_v0  ;;  %v979_v39 = vmul.f32 %v963_v35, %v2173_v62  ;;  %v964_v6 = vfloor.f32 %v948_v36  ;;  %v972_v9 = vfloor.f32 %v956_v11 }
  0x84   : > { %v2396_v12 = vmul.f32 %v2372_v41, %v2250_v1  ;;  %v2399_v4 = vmul.f32 %v2348_v20, %v1001_v58  ;;  %v987_v5 = vmul.f32 %v971_v44, %v2173_v62  ;;  %v859_v7 = vadd.f32 0.5, %v2375_v50 }
  0x85   : > { %v2405_v25 = vmul.f32 %v2372_v41, %v2274_v0  ;;  %v2407_v28 = vfloor.f32 %v949_v48  ;;  %v2409_v17 = vfloor.f32 %v957_v49  ;;  %v869_v19 = vmul.f32 %v2164_v51, %v851_v15 }
  0x86   : > { %v2413_v1 = vmul.f32 %v2309_v52, %v994_v56  ;;  %v2416_v58 = vmul.f32 %v2309_v52, %v1002_v57  ;;  %v950_v21 = vmul.f32 %v2218_v30, %v932_v59  ;;  %v940_v22 = vadd.f32 0.5, %v2387_v55 }
  0x87   : > { %v2421_v27 = vmul.f32 %v2348_v20, %v994_v56  ;;  %v995_v0 = vsub.f32 %v2288_v32, %v979_v39  ;;  %v980_v47 = vmul.f32 %v964_v6, %v2173_v62  ;;  %v988_v34 = vmul.f32 %v972_v9, %v2173_v62 }
  0x88   : > { %v2427_v36 = vmul.f32 %v2341_v14, %v962_v24  ;;  %v2431_v11 = vmul.f32 %v2341_v14, %v2331_v3  ;;  %v1003_v48 = vsub.f32 %v2299_v38, %v987_v5  ;;  %v877_v49 = vmul.f32 %v2164_v51, %v859_v7 }
  0x89   : > { %3188 = vst [vmem:[#allocation22_spill] sm:$0xff] %v2421_v27  ;;  %v2436_v15 = vmul.f32 %v2372_v41, %v962_v24  ;;  %v981_v32 = vmul.f32 %v2407_v28, %v2173_v62  ;;  %v989_v56 = vmul.f32 %v2409_v17, %v2173_v62  ;;  %v885_v59 = vfloor.f32 %v869_v19 }
  0x8a   : > { %v2443_v39 = vmul.f32 %v2348_v20, %v1002_v57  ;;  %v2447_v27 = vmul.f32 %v2372_v41, %v2331_v3  ;;  %v2449_v38 = vfloor.f32 %v950_v21  ;;  %v958_v5 = vmul.f32 %v2218_v30, %v940_v22 }
  0x8b   : > { %3189 = vst [vmem:[#allocation23_spill] sm:$0xff] %v2436_v15  ;;  %v2453_v24 = vmul.f32 %v2309_v52, %v995_v0  ;;  %v2456_v7 = vmul.f32 %v2341_v14, %v963_v35  ;;  %v996_v15 = vsub.f32 %v2313_v16, %v980_v47  ;;  %v1004_v19 = vsub.f32 %v2316_v53, %v988_v34 }
  0x8c   : > { %3190 = vst [vmem:[#allocation24_spill] sm:$0xff] %v2449_v38  ;;  %v2464_v3 = vmul.f32 %v2309_v52, %v1003_v48  ;;  %v2467_v57 = vmul.f32 %v2341_v14, %v971_v44  ;;  %v2470_v21 = vmul.f32 %v2348_v20, %v995_v0  ;;  %v893_v22 = vfloor.f32 %v877_v49 }
  0x8d   : > { %3191 = vst [vmem:[#allocation25_spill] sm:$0xff] %v2453_v24  ;;  %3192 = vst [vmem:[#allocation26_spill] sm:$0xff] %v2456_v7  ;;  %v2473_v24 = vmul.f32 %v2372_v41, %v963_v35  ;;  %v997_v16 = vsub.f32 %v2326_v60, %v981_v32  ;;  %v1005_v53 = vsub.f32 %v2329_v23, %v989_v56 }
  0x8e   : > { %3193 = vst [vmem:[#allocation27_spill] sm:$0xff] %v2470_v21  ;;  %v901_v47 = vmul.f32 %v885_v59, %v2153_v42  ;;  %v2479_v34 = vmul.f32 %v2348_v20, %v1003_v48  ;;  %v2482_v7 = vmul.f32 %v2372_v41, %v971_v44  ;;  %v982_v0 = vmul.f32 %v2449_v38, %v2173_v62 }
  0x8f   : > { %v2486_v21 = vfloor.f32 %v958_v5  ;;  %v2490_v35 = vmul.f32 %v2309_v52, %v996_v15  ;;  %v2493_v60 = vmul.f32 %v2341_v14, %v964_v6  ;;  %v2496_v23 = vmul.f32 %v2309_v52, %v1004_v19 }
  0x90   : > { %v2499_v48 = vmul.f32 %v2348_v20, %v996_v15  ;;  %v2502_v44 = vmul.f32 %v2341_v14, %v972_v9  ;;  %v2505_v49 = vmul.f32 %v2372_v41, %v964_v6  ;;  %v2508_v32 = vmul.f32 %v2348_v20, %v1004_v19 }
  0x91   : > { %3194 = vst [vmem:[#allocation28_spill] sm:$0xff] %v2486_v21  ;;  %3195 = vst [vmem:[#allocation29_spill] sm:$0xff] %v2493_v60  ;;  %v909_v56 = vmul.f32 %v893_v22, %v2153_v42  ;;  %v2512_v59 = vmul.f32 %v2372_v41, %v972_v9  ;;  %v2515_v5 = vmul.f32 %v2309_v52, %v997_v16 }
  0x92   : > { %3196 = vst [vmem:[#allocation30_spill] sm:$0xff] %v2496_v23  ;;  %3197 = vst [vmem:[#allocation31_spill] sm:$0xff] %v2499_v48  ;;  %v2518_v15 = vmul.f32 %v2309_v52, %v1005_v53  ;;  %v2521_v48 = vsub.f32 %v2353_v26, %v901_v47  ;;  %v2524_v19 = vmul.f32 %v2348_v20, %v997_v16 }
  0x93   : > { %3198 = vst [vmem:[#allocation32_spill] sm:$0xff] %v2502_v44  ;;  %3199 = vst [vmem:[#allocation33_spill] sm:$0xff] %v2505_v49  ;;  %v2527_v22 = vmul.f32 %v2348_v20, %v1005_v53  ;;  %v2530_v9 = vsub.f32 %v2359_v33, %v982_v0  ;;  %v2542_v16 = vmul.f32 %v2341_v14, %v2409_v17 }
  0x94   : > { %3200 = vst [vmem:[#allocation34_spill] sm:$0xff] %v2508_v32  ;;  %3201 = vst [vmem:[#allocation35_spill] sm:$0xff] %v2512_v59  ;;  %v990_v59 = vmul.f32 %v2486_v21, %v2173_v62  ;;  %v2538_v32 = vmul.f32 %v2341_v14, %v2407_v28  ;;  %v2548_v0 = vmul.f32 %v2372_v41, %v2407_v28  ;;  %v933_v28 = vadd.f32 0.5, %v2521_v48 }
  0x95   : > { %3202 = vst [vmem:[#allocation36_spill] sm:$0xff] %v2515_v5  ;;  %3203 = vst [vmem:[#allocation37_spill] sm:$0xff] %v2518_v15 }
  0x96   : > { %3204 = vst [vmem:[#allocation38_spill] sm:$0xff] %v2521_v48  ;;  %3205 = vst [vmem:[#allocation39_spill] sm:$0xff] %v2524_v19  ;;  %v951_v49 = vmul.f32 %v2218_v30, %v933_v28 }
  0x97   : > { %3206 = vst [vmem:[#allocation40_spill] sm:$0xff] %v2527_v22  ;;  %3207 = vst [vmem:[#allocation41_spill] sm:$0xff] %v2530_v9 }
  0x98   : > { %3208 = vst [vmem:[#allocation42_spill] sm:$0xff] %v2538_v32  ;;  %3209 = vst [vmem:[#allocation43_spill] sm:$0xff] %v2542_v16  ;;  %v2568_v16 = vmul.f32 %v2309_v52, %v2530_v9 }
  0x99   : > { %3210 = vst [vmem:[#allocation44_spill] sm:$0xff] %v2548_v0 }
  0x9a   : > { %3213 = vst [vmem:[#allocation47_spill] sm:$0xff] %v2568_v16 }
 0x128   : > { %v476_v44 = vpop.f32.mrb[0].mxu0  ;;  %v524_v6 = vpop.f32.mrb[0].mxu1 }
 0x129   : > { %v477_v15 = vadd.f32 %v476_v44, %v2248_v61  ;;  %v525_v26 = vadd.f32 %v524_v6, %v2248_v61  ;;  %v478_v47 = vpop.f32.mrb[1].mxu0  ;;  %v526_v5 = vpop.f32.mrb[1].mxu1  ;;  %v2551_v44 = vsub.f32 %v2375_v50, %v909_v56 }
 0x12a   : > { %v479_v33 = vadd.f32 %v478_v47, %v2265_v8  ;;  %v527_v53 = vadd.f32 %v526_v5, %v2265_v8  ;;  %v2561_v5 = vmul.f32 %v2372_v41, %v2409_v17 }
 0x12b   : > { %3211 = vst [vmem:[#allocation45_spill] sm:$0xff] %v2551_v44  ;;  %571 = vst [vmem:[%s2555_s8] sm:$0xff] %v477_v15  ;;  %v1567_v6 = vmul.f32 -1.442695, %v477_v15  ;;  %v1583_v47 = vmul.f32 -1.442695, %v525_v26  ;;  %v2571_v15 = vsub.f32 %v2387_v55, %v990_v59  ;;  %v941_v16 = vadd.f32 0.5, %v2551_v44 }
 0x12c   : > { %587 = vst [vmem:[%s2555_s8 + $0x80] sm:$0xff] %v525_v26  ;;  %3212 = vst [vmem:[#allocation46_spill] sm:$0xff] %v2561_v5  ;;  %v1568_v50 = vmul.f32 -1.442695, %v479_v33  ;;  %v1584_v56 = vmul.f32 -1.442695, %v527_v53 }
 0x12d   : > { %572 = vst [vmem:[%s2555_s8 + $0x8] sm:$0xff] %v479_v33  ;;  %588 = vst [vmem:[%s2555_s8 + $0x88] sm:$0xff] %v527_v53  ;;  %v482_v0 = vpop.f32.mrb[2].mxu0  ;;  %v530_v22 = vpop.f32.mrb[2].mxu1  ;;  %1702 = vpow2.f32 %v1567_v6  ;;  %v803_v5 = vadd.s32 56, %v2155_v43 }
 0x12e   : > { %3214 = vst [vmem:[#allocation48_spill] sm:$0xff] %v2571_v15  ;;  %v483_v17 = vadd.f32 %v482_v0, %v2248_v61  ;;  %v531_v26 = vadd.f32 %v530_v22, %v2248_v61  ;;  %v484_v33 = vpop.f32.mrb[3].mxu0  ;;  %v532_v53 = vpop.f32.mrb[3].mxu1  ;;  %1704 = vpow2.f32 %v1583_v47  ;;  %v811_v0 = vadd.s32 120, %v2155_v43 }
 0x12f   : > { %v485_v19 = vadd.f32 %v484_v33, %v2265_v8  ;;  %v533_v32 = vadd.f32 %v532_v53, %v2265_v8  ;;  %1706 = vpow2.f32 %v1568_v50  ;;  %v2586_v53 = vmul.f32 %v2309_v52, %v2571_v15 }
 0x130   : > { %573 = vst [vmem:[%s2555_s8 + $0x10] sm:$0xff] %v483_v17  ;;  %v1569_v55 = vmul.f32 -1.442695, %v483_v17  ;;  %589 = vst [vmem:[%s2555_s8 + $0x90] sm:$0xff] %v531_v26  ;;  %v1585_v59 = vmul.f32 -1.442695, %v531_v26  ;;  %1708 = vpow2.f32 %v1584_v56 }
 0x131   : > { %574 = vst [vmem:[%s2555_s8 + $0x18] sm:$0xff] %v485_v19  ;;  %v1570_v22 = vmul.f32 -1.442695, %v485_v19  ;;  %590 = vst [vmem:[%s2555_s8 + $0x98] sm:$0xff] %v533_v32  ;;  %v1586_v6 = vmul.f32 -1.442695, %v533_v32  ;;  %v819_v19 = vcvt.s32.f32 %v803_v5 }
 0x132   : > { %v488_v47 = vpop.f32.mrb[4].mxu0  ;;  %v536_v33 = vpop.f32.mrb[4].mxu1  ;;  %3215 = vst [vmem:[#allocation49_spill] sm:$0xff] %v2586_v53  ;;  %1710 = vpow2.f32 %v1569_v55 }
 0x133   : > { %v489_v50 = vadd.f32 %v488_v47, %v2248_v61  ;;  %v537_v17 = vadd.f32 %v536_v33, %v2248_v61  ;;  %v490_v43 = vpop.f32.mrb[5].mxu0  ;;  %v538_v56 = vpop.f32.mrb[5].mxu1  ;;  %1712 = vpow2.f32 %v1585_v59  ;;  %v959_v47 = vmul.f32 %v2218_v30, %v941_v16 }
 0x134   : > { %v491_v32 = vadd.f32 %v490_v43, %v2265_v8  ;;  %v539_v26 = vadd.f32 %v538_v56, %v2265_v8  ;;  %1714 = vpow2.f32 %v1570_v22  ;;  %v494_v5 = vpop.f32.mrb[6].mxu0  ;;  %v542_v59 = vpop.f32.mrb[6].mxu1  ;;  %v827_v43 = vcvt.s32.f32 %v811_v0 }
 0x135   : > { %575 = vst [vmem:[%s2555_s8 + $0x20] sm:$0xff] %v489_v50  ;;  %v1571_v53 = vmul.f32 -1.442695, %v489_v50  ;;  %591 = vst [vmem:[%s2555_s8 + $0xa0] sm:$0xff] %v537_v17  ;;  %v1587_v55 = vmul.f32 -1.442695, %v537_v17  ;;  %1716 = vpow2.f32 %v1586_v6  ;;  %v495_v28 = vadd.f32 %v494_v5, %v2248_v61 }
 0x136   : > { %576 = vst [vmem:[%s2555_s8 + $0x28] sm:$0xff] %v491_v32  ;;  %v1572_v33 = vmul.f32 -1.442695, %v491_v32  ;;  %592 = vst [vmem:[%s2555_s8 + $0xa8] sm:$0xff] %v539_v26  ;;  %v1588_v23 = vmul.f32 -1.442695, %v539_v26  ;;  %v2600_v22 = vadd.f32 %v542_v59, %v2248_v61  ;;  %v2603_v16 = vadd.f32 %v2160_v46, %v819_v19 }
 0x137   : > { %1718 = vpow2.f32 %v1571_v53  ;;  %v496_v50 = vpop.f32.mrb[7].mxu0  ;;  %v544_v17 = vpop.f32.mrb[7].mxu1  ;;  %v2613_v0 = vmul.f32 %v2341_v14, %v2449_v38  ;;  %577 = vst [vmem:[%s2555_s8 + $0x30] sm:$0xff] %v495_v28  ;;  %v1573_v32 = vmul.f32 -1.442695, %v495_v28  ;;  %v2620_v19 = vmul.f32 %v2341_v14, %v2486_v21 }
 0x138   : > { %3216 = vst [vmem:[#allocation50_spill] sm:$0xff] %v2603_v16  ;;  %1720 = vpow2.f32 %v1587_v55  ;;  %v2606_v6 = vadd.f32 %v496_v50, %v2265_v8  ;;  %v2609_v56 = vadd.f32 %v544_v17, %v2265_v8  ;;  %v1703_v53 = vpop.eup %1702  ;;  %593 = vst [vmem:[%s2555_s8 + $0xb0] sm:$0xff] %v2600_v22  ;;  %v2622_v26 = vfloor.f32 %v951_v49  ;;  %v500_v59 = vpop.f32.mrb[8].mxu0 }
 0x139   : > { %3217 = vst [vmem:[#allocation51_spill] sm:$0xff] %v2613_v0  ;;  %1722 = vpow2.f32 %v1572_v33  ;;  %3218 = vst [vmem:[#allocation52_spill] sm:$0xff] %v2620_v19  ;;  %v1705_v55 = vpop.eup %1704  ;;  %v699_v5 = vadd.f32 1.0, %v1703_v53  ;;  %v2628_v50 = vfloor.f32 %v959_v47  ;;  %v2631_v33 = vadd.f32 %v2160_v46, %v827_v43  ;;  %v548_v19 = vpop.f32.mrb[8].mxu1 }
 0x13a   : > { %3219 = vst [vmem:[#allocation53_spill] sm:$0xff] %v2622_v26  ;;  %1724 = vpow2.f32 %v1588_v23  ;;  %578 = vst [vmem:[%s2555_s8 + $0x38] sm:$0xff] %v2606_v6  ;;  %v1707_v28 = vpop.eup %1706  ;;  %v715_v17 = vadd.f32 1.0, %v1705_v55  ;;  %v501_v49 = vadd.f32 %v500_v59, %v2248_v61  ;;  %v502_v0 = vpop.f32.mrb[9].mxu0  ;;  %v852_v23 = vadd.f32 0.5, %v2603_v16 }
 0x13b   : > { %594 = vst [vmem:[%s2555_s8 + $0xb8] sm:$0xff] %v2609_v56  ;;  %3220 = vst [vmem:[#allocation54_spill] sm:$0xff] %v2628_v50  ;;  %1726 = vpow2.f32 %v1573_v32  ;;  %v1709_v53 = vpop.eup %1708  ;;  %v700_v30 = vadd.f32 1.0, %v1707_v28  ;;  %v549_v47 = vadd.f32 %v548_v19, %v2248_v61  ;;  %v2637_v46 = vadd.f32 %v502_v0, %v2265_v8  ;;  %v550_v43 = vpop.f32.mrb[9].mxu1 }
 0x13c   : > { %3221 = vst [vmem:[#allocation55_spill] sm:$0xff] %v2631_v33  ;;  %1728 = vrcp.f32 %v699_v5  ;;  %v1711_v14 = vpop.eup %1710  ;;  %v716_v32 = vadd.f32 1.0, %v1709_v53  ;;  %579 = vst [vmem:[%s2555_s8 + $0x40] sm:$0xff] %v501_v49  ;;  %v551_v55 = vadd.f32 %v550_v43, %v2265_v8  ;;  %v2643_v59 = vmul.f32 %v2622_v26, %v2173_v62  ;;  %v506_v0 = vpop.f32.mrb[10].mxu0 }
 0x13d   : > { %1730 = vrcp.f32 %v715_v17  ;;  %v1713_v16 = vpop.eup %1712  ;;  %v701_v5 = vadd.f32 1.0, %v1711_v14  ;;  %595 = vst [vmem:[%s2555_s8 + $0xc0] sm:$0xff] %v549_v47  ;;  %580 = vst [vmem:[%s2555_s8 + $0x48] sm:$0xff] %v2637_v46  ;;  %v2650_v19 = vmul.f32 %v2628_v50, %v2173_v62  ;;  %v2653_v28 = vadd.f32 0.5, %v2631_v33  ;;  %v508_v14 = vpop.f32.mrb[11].mxu0 }
 0x13e   : > { %3222 = vst [vmem:[#allocation56_spill] sm:$0xff] %v2643_v59  ;;  %1732 = vrcp.f32 %v700_v30  ;;  %v1715_v17 = vpop.eup %1714  ;;  %v717_v53 = vadd.f32 1.0, %v1713_v16  ;;  %596 = vst [vmem:[%s2555_s8 + $0xc8] sm:$0xff] %v551_v55  ;;  %v507_v43 = vadd.f32 %v506_v0, %v2248_v61  ;;  %v554_v30 = vpop.f32.mrb[10].mxu1  ;;  %v2658_v26 = vmul.f32 %v2164_v51, %v852_v23 }
 0x13f   : > { %3223 = vst [vmem:[#allocation57_spill] sm:$0xff] %v2650_v19  ;;  %3224 = vst [vmem:[#allocation58_spill] sm:$0xff] %v2653_v28  ;;  %1734 = vrcp.f32 %v716_v32  ;;  %v1717_v42 = vpop.eup %1716  ;;  %v702_v62 = vadd.f32 1.0, %v1715_v17  ;;  %v2661_v33 = vadd.f32 %v554_v30, %v2248_v61  ;;  %v2664_v32 = vadd.f32 %v508_v14, %v2265_v8  ;;  %v556_v16 = vpop.f32.mrb[11].mxu1 }
 0x140   : > { %3225 = vst [vmem:[#allocation59_spill] sm:$0xff] %v2658_v26  ;;  %1736 = vrcp.f32 %v701_v5  ;;  %v718_v0 = vadd.f32 1.0, %v1717_v42  ;;  %v1589_v52 = vmul.f32 -1.442695, %v2600_v22  ;;  %581 = vst [vmem:[%s2555_s8 + $0x50] sm:$0xff] %v507_v43  ;;  %v2669_v23 = vadd.f32 %v556_v16, %v2265_v8  ;;  %v512_v42 = vpop.f32.mrb[12].mxu0 }
 0x141   : > { %v1719_v50 = vpop.eup %1718  ;;  %1738 = vrcp.f32 %v717_v53  ;;  %v1574_v30 = vmul.f32 -1.442695, %v2606_v6  ;;  %v2673_v21 = vmul.f32 -1.442695, %v2609_v56  ;;  %597 = vst [vmem:[%s2555_s8 + $0xd0] sm:$0xff] %v2661_v33  ;;  %582 = vst [vmem:[%s2555_s8 + $0x58] sm:$0xff] %v2664_v32 }
 0x142   : > { %3226 = vst [vmem:[#allocation60_spill] sm:$0xff] %v2669_v23  ;;  %v1721_v5 = vpop.eup %1720  ;;  %1740 = vrcp.f32 %v702_v62  ;;  %v703_v17 = vadd.f32 1.0, %v1719_v50  ;;  %v2679_v14 = vmul.f32 -1.442695, %v501_v49  ;;  %598 = vst [vmem:[%s2555_s8 + $0xd8] sm:$0xff] %v2669_v23  ;;  %v2684_v62 = vadd.f32 %v512_v42, %v2248_v61  ;;  %v560_v6 = vpop.f32.mrb[12].mxu1 }
 0x143   : > { %v1723_v53 = vpop.eup %1722  ;;  %1742 = vrcp.f32 %v718_v0  ;;  %v719_v22 = vadd.f32 1.0, %v1721_v5  ;;  %v514_v50 = vpop.f32.mrb[13].mxu0  ;;  %v2687_v15 = vadd.f32 %v560_v6, %v2248_v61  ;;  %v2692_v38 = vmul.f32 -1.442695, %v549_v47 }
 0x144   : > { %3227 = vst [vmem:[#allocation61_spill] sm:$0xff] %v2684_v62  ;;  %v1725_v56 = vpop.eup %1724  ;;  %1744 = vrcp.f32 %v703_v17  ;;  %v704_v16 = vadd.f32 1.0, %v1723_v53  ;;  %v2690_v0 = vadd.f32 %v514_v50, %v2265_v8  ;;  %v562_v49 = vpop.f32.mrb[13].mxu1  ;;  %583 = vst [vmem:[%s2555_s8 + $0x60] sm:$0xff] %v2684_v62  ;;  %v2700_v6 = vmul.f32 -1.442695, %v2637_v46 }
 0x145   : > { %3228 = vst [vmem:[#allocation62_spill] sm:$0xff] %v2687_v15  ;;  %v1727_v5 = vpop.eup %1726  ;;  %1746 = vrcp.f32 %v719_v22  ;;  %v720_v41 = vadd.f32 1.0, %v1725_v56  ;;  %v2697_v17 = vadd.f32 %v562_v49, %v2265_v8  ;;  %v2702_v50 = vmul.f32 -1.442695, %v551_v55  ;;  %599 = vst [vmem:[%s2555_s8 + $0xe0] sm:$0xff] %v2687_v15  ;;  %v518_v47 = vpop.f32.mrb[14].mxu0 }
 0x146   : > { %3229 = vst [vmem:[#allocation63_spill] sm:$0xff] %v2690_v0  ;;  %v1729_v42 = vpop.eup %1728  ;;  %1748 = vrcp.f32 %v704_v16  ;;  %v705_v53 = vadd.f32 1.0, %v1727_v5  ;;  %584 = vst [vmem:[%s2555_s8 + $0x68] sm:$0xff] %v2690_v0  ;;  %v2709_v49 = vmul.f32 -1.442695, %v507_v43  ;;  %v2713_v16 = vpop.f32.mrb[14].mxu1  ;;  %v2719_v0 = vadd.f32 %v518_v47, %v2248_v61 }
 0x147   : > { %3230 = vst [vmem:[#allocation64_spill] sm:$0xff] %v2697_v17  ;;  %v1731_v22 = vpop.eup %1730  ;;  %v1017_v56 = vmul.f32 %v1729_v42, %v2269_v13  ;;  %v1049_v20 = vmul.f32 %v1729_v42, %v1729_v42  ;;  %1750 = vrcp.f32 %v720_v41  ;;  %600 = vst [vmem:[%s2555_s8 + $0xe8] sm:$0xff] %v2697_v17  ;;  %v2715_v46 = vpop.f32.mrb[15].mxu0 }
 0x148   : > { %3231 = vst [vmem:[#allocation65_spill] sm:$0xff] %v2709_v49  ;;  %v1733_v55 = vpop.eup %1732  ;;  %v1033_v5 = vmul.f32 %v1731_v22, %v2269_v13  ;;  %v1065_v9 = vmul.f32 %v1731_v22, %v1731_v22  ;;  %1752 = vrcp.f32 %v705_v53  ;;  %3232 = vst [vmem:[#allocation66_spill] sm:$0xff] %v2719_v0  ;;  %v2721_v51 = vpop.f32.mrb[15].mxu1 }
 0x149   : > { %v1735_v41 = vpop.eup %1734  ;;  %v1089_v43 = vmul.f32 %v2272_v63, %v1049_v20  ;;  %v1018_v42 = vmul.f32 %v1733_v55, %v2280_v18  ;;  %v1050_v17 = vmul.f32 %v1733_v55, %v1733_v55  ;;  %1754 = vpow2.f32 %v1589_v52  ;;  %585 = vst [vmem:[%s2555_s8 + $0x70] sm:$0xff] %v2719_v0 }
 0x14a   : > { %v1737_v28 = vpop.eup %1736  ;;  %v1105_v26 = vmul.f32 %v2272_v63, %v1065_v9  ;;  %v1034_v15 = vmul.f32 %v1735_v41, %v2280_v18  ;;  %v1066_v44 = vmul.f32 %v1735_v41, %v1735_v41  ;;  %1756 = vpow2.f32 %v1574_v30 }
 0x14b   : > { %v1739_v53 = vpop.eup %1738  ;;  %v1121_v47 = vadd.f32 %v1089_v43, %v1017_v56  ;;  %v1090_v22 = vmul.f32 %v2296_v37, %v1050_v17  ;;  %v1019_v19 = vmul.f32 %v1737_v28, %v2269_v13  ;;  %v1051_v20 = vmul.f32 %v1737_v28, %v1737_v28 }
 0x14c   : > { %v1741_v62 = vpop.eup %1740  ;;  %v1137_v49 = vadd.f32 %v1105_v26, %v1033_v5  ;;  %v1106_v52 = vmul.f32 %v2296_v37, %v1066_v44  ;;  %v1035_v55 = vmul.f32 %v1739_v53, %v2269_v13  ;;  %v1067_v9 = vmul.f32 %v1739_v53, %v1739_v53 }
 0x14d   : > { %v1743_v60 = vpop.eup %1742  ;;  %v1161_v41 = vadd.f32 %v2319_v54, %v1121_v47  ;;  %v1122_v30 = vadd.f32 %v1090_v22, %v1018_v42  ;;  %v1091_v0 = vmul.f32 %v2272_v63, %v1051_v20  ;;  %v1020_v56 = vmul.f32 %v1741_v62, %v2280_v18 }
 0x14e   : > { %v1745_v43 = vpop.eup %1744  ;;  %v1177_v17 = vadd.f32 %v2319_v54, %v1137_v49  ;;  %v1138_v48 = vadd.f32 %v1106_v52, %v1034_v15  ;;  %v1107_v28 = vmul.f32 %v2272_v63, %v1067_v9  ;;  %v1052_v26 = vmul.f32 %v1741_v62, %v1741_v62 }
 0x14f   : > { %v1747_v5 = vpop.eup %1746  ;;  %v1233_v44 = vadd.f32 %v2335_v10, %v1161_v41  ;;  %v1162_v53 = vadd.f32 %v2344_v29, %v1122_v30  ;;  %v1123_v59 = vadd.f32 %v1091_v0, %v1019_v19  ;;  %v1036_v47 = vmul.f32 %v1743_v60, %v2280_v18 }
 0x150   : > { %v1749_v42 = vpop.eup %1748  ;;  %v1249_v22 = vadd.f32 %v2363_v31, %v1177_v17  ;;  %v1178_v20 = vadd.f32 %v2344_v29, %v1138_v48  ;;  %v1139_v23 = vadd.f32 %v1107_v28, %v1035_v55  ;;  %v1092_v15 = vmul.f32 %v2296_v37, %v1052_v26 }
 0x151   : > { %v1751_v49 = vpop.eup %1750  ;;  %v1305_v62 = vadd.f32 %v2369_v40, %v1233_v44  ;;  %v1234_v52 = vadd.f32 %v2378_v45, %v1162_v53  ;;  %v1163_v10 = vadd.f32 %v2319_v54, %v1123_v59  ;;  %v1068_v9 = vmul.f32 %v1743_v60, %v1743_v60  ;;  %v3233_v44 = vld [vmem:[#allocation22_spill] sm:$0xff] }
 0x152   : > { %v1753_v19 = vpop.eup %1752  ;;  %v1321_v0 = vadd.f32 %v2391_v2, %v1249_v22  ;;  %v1250_v41 = vadd.f32 %v2399_v4, %v1178_v20  ;;  %v1179_v31 = vadd.f32 %v2319_v54, %v1139_v23  ;;  %v1124_v30 = vadd.f32 %v1092_v15, %v1020_v56 }
 0x153   : > { %v1755_v48 = vpop.eup %1754  ;;  %1337 = vst [vmem:[%s2752_s9] sm:$0xff] %v1305_v62  ;;  %v1306_v40 = vadd.f32 %v2396_v12, %v1234_v52  ;;  %v1235_v45 = vadd.f32 %v2413_v1, %v1163_v10  ;;  %v1108_v2 = vmul.f32 %v2296_v37, %v1068_v9  ;;  %v1021_v4 = vmul.f32 %v1745_v43, %v2269_v13 }
 0x154   : > { %v1757_v60 = vpop.eup %1756  ;;  %1353 = vst [vmem:[%s2752_s9 + $0x80] sm:$0xff] %v1321_v0  ;;  %v1322_v59 = vadd.f32 %v2405_v25, %v1250_v41  ;;  %v1251_v23 = vadd.f32 %v2416_v58, %v1179_v31  ;;  %v1164_v55 = vadd.f32 %v2344_v29, %v1124_v30  ;;  %v1053_v56 = vmul.f32 %v1745_v43, %v1745_v43 }
 0x155   : > { %1338 = vst [vmem:[%s2752_s9 + $0x8] sm:$0xff] %v1306_v40  ;;  %v1307_v12 = vadd.f32 %v2427_v36, %v1235_v45  ;;  %v1140_v17 = vadd.f32 %v1108_v2, %v1036_v47  ;;  %v1037_v1 = vmul.f32 %v1747_v5, %v2269_v13  ;;  %v1069_v28 = vmul.f32 %v1747_v5, %v1747_v5  ;;  %v3234_v5 = vld [vmem:[#allocation23_spill] sm:$0xff]  ;;  %v3235_v2 = vld [vmem:[#allocation25_spill] sm:$0xff] }
 0x156   : > { %1354 = vst [vmem:[%s2752_s9 + $0x88] sm:$0xff] %v1322_v59  ;;  %v1323_v26 = vadd.f32 %v2431_v11, %v1251_v23  ;;  %v1236_v53 = vadd.f32 %v3233_v44, %v1164_v55  ;;  %v1093_v25 = vmul.f32 %v2272_v63, %v1053_v56  ;;  %v1022_v58 = vmul.f32 %v1749_v42, %v2280_v18  ;;  %v3236_v23 = vld [vmem:[#allocation26_spill] sm:$0xff]  ;;  %v3244_v44 = vld [vmem:[#allocation57_spill] sm:$0xff] }
 0x157   : > { %1339 = vst [vmem:[%s2752_s9 + $0x10] sm:$0xff] %v1307_v12  ;;  %v1180_v43 = vadd.f32 %v2344_v29, %v1140_v17  ;;  %v1109_v22 = vmul.f32 %v2272_v63, %v1069_v28  ;;  %v1054_v36 = vmul.f32 %v1749_v42, %v1749_v42  ;;  %v1038_v47 = vmul.f32 %v1751_v49, %v2280_v18  ;;  %v3239_v28 = vld [vmem:[#allocation56_spill] sm:$0xff] }
 0x158   : > { %1355 = vst [vmem:[%s2752_s9 + $0x90] sm:$0xff] %v1323_v26  ;;  %v1308_v20 = vadd.f32 %v3234_v5, %v1236_v53  ;;  %v1125_v15 = vadd.f32 %v1093_v25, %v1021_v4  ;;  %v1070_v11 = vmul.f32 %v1751_v49, %v1751_v49  ;;  %v1023_v62 = vmul.f32 %v1753_v19, %v2269_v13  ;;  %v3240_v26 = vld [vmem:[#allocation38_spill] sm:$0xff] }
 0x159   : > { %v1252_v52 = vadd.f32 %v2443_v39, %v1180_v43  ;;  %v1141_v10 = vadd.f32 %v1109_v22, %v1037_v1  ;;  %v1094_v9 = vmul.f32 %v2296_v37, %v1054_v36  ;;  %v1055_v0 = vmul.f32 %v1753_v19, %v1753_v19  ;;  %v3246_v25 = vld [vmem:[#allocation62_spill] sm:$0xff]  ;;  %v3247_v43 = vld [vmem:[#allocation59_spill] sm:$0xff] }
 0x15a   : > { %1340 = vst [vmem:[%s2752_s9 + $0x18] sm:$0xff] %v1308_v20  ;;  %v1165_v42 = vadd.f32 %v2319_v54, %v1125_v15  ;;  %v1110_v41 = vmul.f32 %v2296_v37, %v1070_v11  ;;  %v721_v31 = vadd.f32 1.0, %v1755_v48  ;;  %v706_v30 = vadd.f32 1.0, %v1757_v60  ;;  %v3248_v36 = vld [vmem:[#allocation58_spill] sm:$0xff] }
 0x15b   : > { %v1324_v49 = vadd.f32 %v2447_v27, %v1252_v52  ;;  %v1181_v40 = vadd.f32 %v2319_v54, %v1141_v10  ;;  %v1126_v45 = vadd.f32 %v1094_v9, %v1022_v58  ;;  %v1095_v39 = vmul.f32 %v2272_v63, %v1055_v0 }
 0x15c   : > { %v1237_v4 = vadd.f32 %v3235_v2, %v1165_v42  ;;  %v1142_v59 = vadd.f32 %v1110_v41, %v1038_v47  ;;  %1758 = vrcp.f32 %v721_v31  ;;  %v1593_v19 = vmul.f32 -1.442695, %v2661_v33  ;;  %v3249_v47 = vld [vmem:[#allocation15_spill] sm:$0xff] }
 0x15d   : > { %1356 = vst [vmem:[%s2752_s9 + $0x98] sm:$0xff] %v1324_v49  ;;  %v1253_v48 = vadd.f32 %v2464_v3, %v1181_v40  ;;  %v1166_v60 = vadd.f32 %v2344_v29, %v1126_v45  ;;  %v1127_v27 = vadd.f32 %v1095_v39, %v1023_v62  ;;  %1760 = vrcp.f32 %v706_v30  ;;  %v3237_v3 = vld [vmem:[#allocation27_spill] sm:$0xff] }
 0x15e   : > { %v1309_v55 = vadd.f32 %v3236_v23, %v1237_v4  ;;  %v1182_v56 = vadd.f32 %v2344_v29, %v1142_v59  ;;  %1762 = vpow2.f32 %v2673_v21  ;;  %v2798_v33 = vadd.f32 %v2713_v16, %v2248_v61  ;;  %v3238_v16 = vld [vmem:[#allocation60_spill] sm:$0xff] }
 0x15f   : > { %v1325_v12 = vadd.f32 %v2467_v57, %v1253_v48  ;;  %v1238_v17 = vadd.f32 %v3237_v3, %v1166_v60  ;;  %v1167_v1 = vadd.f32 %v2319_v54, %v1127_v27  ;;  %1764 = vpow2.f32 %v2679_v14 }
 0x160   : > { %1341 = vst [vmem:[%s2752_s9 + $0x20] sm:$0xff] %v1309_v55  ;;  %v1254_v21 = vadd.f32 %v2479_v34, %v1182_v56  ;;  %1766 = vpow2.f32 %v2692_v38  ;;  %v1578_v61 = vmul.f32 -1.442695, %v2664_v32  ;;  %601 = vst [vmem:[%s2555_s8 + $0xf0] sm:$0xff] %v2798_v33  ;;  %v2819_v57 = vadd.f32 %v2715_v46, %v2265_v8 }
 0x161   : > { %1357 = vst [vmem:[%s2752_s9 + $0xa0] sm:$0xff] %v1325_v12  ;;  %v1310_v14 = vadd.f32 %v2473_v24, %v1238_v17  ;;  %v1239_v34 = vadd.f32 %v2490_v35, %v1167_v1  ;;  %1768 = vpow2.f32 %v2700_v6  ;;  %v2829_v38 = vadd.f32 %v2721_v51, %v2265_v8  ;;  %v3241_v35 = vld [vmem:[#allocation29_spill] sm:$0xff] }
 0x162   : > { %v1326_v32 = vadd.f32 %v2482_v7, %v1254_v21  ;;  %1770 = vpow2.f32 %v2702_v50  ;;  %v1594_v46 = vmul.f32 -1.442695, %v3238_v16  ;;  %v2836_v24 = vsub.f32 %v3240_v26, %v3239_v28  ;;  %586 = vst [vmem:[%s2555_s8 + $0x78] sm:$0xff] %v2819_v57  ;;  %v3242_v8 = vld [vmem:[#allocation65_spill] sm:$0xff] }
 0x163   : > { %1342 = vst [vmem:[%s2752_s9 + $0x28] sm:$0xff] %v1310_v14  ;;  %v1311_v51 = vadd.f32 %v3241_v35, %v1239_v34  ;;  %1772 = vpow2.f32 %v3242_v8  ;;  %v3243_v7 = vld [vmem:[#allocation61_spill] sm:$0xff]  ;;  %602 = vst [vmem:[%s2555_s8 + $0xf8] sm:$0xff] %v2829_v38  ;;  %v1595_v58 = vmul.f32 -1.442695, %v3246_v25  ;;  %v886_v22 = vfloor.f32 %v3247_v43 }
 0x164   : > { %v1579_v6 = vmul.f32 -1.442695, %v3243_v7  ;;  %v3245_v50 = vld [vmem:[#allocation45_spill] sm:$0xff]  ;;  %1358 = vst [vmem:[%s2752_s9 + $0xa8] sm:$0xff] %v1326_v32  ;;  %1774 = vpow2.f32 %v1593_v19  ;;  %v2855_v5 = vmul.f32 %v3249_v47, %v3248_v36 }
 0x165   : > { %v2846_v53 = vsub.f32 %v3245_v50, %v3244_v44 }
 0x166   : > { %1870 = shalt.err (!%p1867_p9)
}
 0x167   : > { %s1871_s23 = scalar_lea.hbm %s2809_s17, 4096  ;;  %s1875_s8 = scalar_lea.hbm %s3141_s5, 24576 }
 0x168   : > { %p1872_p12 = scmp.ne.s32.totalorder %s2809_s17, %s1871_s23  ;;  %p1876_p0 = scmp.lt.u32.totalorder %s2809_s17, %s3141_s5 }
 0x169   : > { %p1877_p1 = scmp.lt.u32.totalorder %s1875_s8, %s1871_s23  ;;  %p1879_p4 = scmp.lt.u32.totalorder %s1871_s23, %s2809_s17 }
 0x16a   : > { %p1873_p13 = pnand %p1872_p12, %p2042_p10 }
 0x16b   : > { %p1878_p3 = por %p1877_p1, %p1876_p0 }
 0x16c   : > { %p1874_p2 = pneg %p1873_p13 }
 0x16d   : > { %p1880_p5 = por %p1879_p4, %p1878_p3 }
 0x16f   : > { %p1881_p6 = pnand %p1880_p5, %p1874_p2 }
 0x171   : > { %1884 = shalt.err (!%p1881_p6)
}
 0x172   : > { %s1963_s19 = smov 256   ;;  %s1964_s20 = smov 16   ;;  %1343 = vst [vmem:[%s2752_s9 + $0x30] sm:$0xff] %v1311_v51  ;;  %1776 = vpow2.f32 %v1578_v61  ;;  %v3250_v20 = vld [vmem:[#allocation41_spill] sm:$0xff]  ;;  %v3251_v15 = vld [vmem:[#allocation20_spill] sm:$0xff]  ;;  %v3254_v9 = vld [vmem:[#allocation63_spill] sm:$0xff]  ;;  %v1759_v42 = vpop.eup %1758  ;;  %v894_v55 = vfloor.f32 %v2855_v5 }
 0x173   : > { %1643 = dma.vmem_to_hbm [thread:$0]  (%p2042_p10), %s2821_s14, 4096, %s2809_s17, %s1370_s18, %s1963_s19, %s1963_s19, %s1964_s20   ;;  %v2887_v11 = vmul.f32 %v3251_v15, %v3250_v20  ;;  %v3252_v62 = vld [vmem:[#allocation24_spill] sm:$0xff]  ;;  %v3253_v52 = vld [vmem:[#allocation21_spill] sm:$0xff]  ;;  %v1580_v0 = vmul.f32 -1.442695, %v3254_v9  ;;  %1778 = vpow2.f32 %v1594_v46  ;;  %v1761_v39 = vpop.eup %1760  ;;  %v1071_v2 = vmul.f32 %v1759_v42, %v1759_v42  ;;  %v3258_v4 = vld [vmem:[#allocation18_spill] sm:$0xff] }
 0x174   : > { %v2891_v10 = vmul.f32 %v3253_v52, %v3252_v62  ;;  %v3255_v41 = vld [vmem:[#allocation48_spill] sm:$0xff]  ;;  %1780 = vpow2.f32 %v1579_v6  ;;  %v2905_v59 = vmul.f32 %v3258_v4, %v2836_v24  ;;  %v2909_v19 = vmul.f32 %v3258_v4, %v2846_v53  ;;  %v1763_v48 = vpop.eup %1762  ;;  %v3259_v27 = vld [vmem:[#allocation14_spill] sm:$0xff]  ;;  %v3261_v43 = vld [vmem:[#allocation53_spill] sm:$0xff]  ;;  %s1406_s14 = sshll.u32 %s2752_s9, 4  ;;  %s3086_s21 = scalar_lea.hbm %s3142_s6, %s1612_s13  ;;  %s3088_s14 = int_to_ptr.vmem [resolvable:$true] %s1406_s14 }
 0x175   : > { %v2896_v31 = vmul.f32 %v3251_v15, %v3255_v41  ;;  %v3256_v30 = vld [vmem:[#allocation28_spill] sm:$0xff]  ;;  %v1056_v60 = vmul.f32 %v1761_v39, %v1761_v39  ;;  %1782 = vpow2.f32 %v1595_v58  ;;  %v902_v23 = vmul.f32 %v886_v22, %v3259_v27  ;;  %v1765_v56 = vpop.eup %1764  ;;  %v3260_v44 = vld [vmem:[#allocation50_spill] sm:$0xff]  ;;  %v3262_v22 = vld [vmem:[#allocation19_spill] sm:$0xff]  ;;  %s1375_s22 = scalar_lea.sflag [#allocation9], %s2461_s25  ;;  %s1885_s23 = scalar_lea.vmem %s3088_s14, 4096 }
 0x176   : > { %v2900_v49 = vmul.f32 %v3253_v52, %v3256_v30  ;;  %v3257_v40 = vld [vmem:[#allocation64_spill] sm:$0xff]  ;;  %v1039_v12 = vmul.f32 %v1759_v42, %v2269_v13  ;;  %v1111_v3 = vmul.f32 %v2272_v63, %v1071_v2  ;;  %v722_v17 = vadd.f32 1.0, %v1763_v48  ;;  %v1767_v1 = vpop.eup %1766  ;;  %v3263_v5 = vld [vmem:[#allocation30_spill] sm:$0xff]  ;;  %v3265_v41 = vld [vmem:[#allocation31_spill] sm:$0xff]  ;;  %p1886_p7 = scmp.ne.s32.totalorder %s3088_s14, %s1885_s23  ;;  %s1965_s24 = smov [#allocation8]  }
 0x177   : > { %v1596_v45 = vmul.f32 -1.442695, %v3257_v40  ;;  %1784 = vpow2.f32 %v1580_v0  ;;  %v1024_v21 = vmul.f32 %v1761_v39, %v2280_v18  ;;  %v1096_v61 = vmul.f32 %v2296_v37, %v1056_v60  ;;  %v1769_v34 = vpop.eup %1768  ;;  %v3264_v9 = vld [vmem:[#allocation54_spill] sm:$0xff]  ;;  %v3267_v48 = vld [vmem:[#allocation32_spill] sm:$0xff]  ;;  %s1889_s29 = sshll.u32 %s1965_s24, 4  ;;  %s1890_s29 = int_to_ptr.vmem [resolvable:$false] %s1889_s29 }
 0x178   : > { %v707_v14 = vadd.f32 1.0, %v1765_v56  ;;  %v1143_v32 = vadd.f32 %v1111_v3, %v1039_v12  ;;  %v723_v16 = vadd.f32 1.0, %v1767_v1  ;;  %v2919_v46 = vmul.f32 %v3251_v15, %v2836_v24  ;;  %v1771_v28 = vpop.eup %1770  ;;  %v3268_v56 = vld [vmem:[#allocation33_spill] sm:$0xff]  ;;  %p1887_p8 = pnand %p1886_p7, %p2042_p10  ;;  %s1891_s30 = scalar_lea.vmem %s1890_s29, 8192 }
 0x179   : > { %1786 = vpow2.f32 %v1596_v45  ;;  %v1128_v26 = vadd.f32 %v1096_v61, %v1024_v21  ;;  %v708_v35 = vadd.f32 1.0, %v1769_v34  ;;  %v910_v51 = vmul.f32 %v894_v55, %v3259_v27  ;;  %v1773_v8 = vpop.eup %1772  ;;  %v3266_v45 = vld [vmem:[#allocation55_spill] sm:$0xff]  ;;  %p1892_p12 = scmp.lt.s32.totalorder %s3088_s14, %s1890_s29  ;;  %p1893_p13 = scmp.lt.s32.totalorder %s1891_s30, %s1885_s23 }
 0x17a   : > { %1788 = vrcp.f32 %v722_v17  ;;  %v1183_v7 = vadd.f32 %v2319_v54, %v1143_v32  ;;  %v724_v6 = vadd.f32 1.0, %v1771_v28  ;;  %v2924_v50 = vsub.f32 %v3260_v44, %v902_v23  ;;  %v1775_v25 = vpop.eup %1774  ;;  %p1888_p9 = pneg %p1887_p8 }
 0x17b   : > { %1790 = vrcp.f32 %v707_v14  ;;  %v1168_v58 = vadd.f32 %v2344_v29, %v1128_v26  ;;  %v709_v24 = vadd.f32 1.0, %v1773_v8  ;;  %v2929_v36 = vmul.f32 %v3262_v22, %v3261_v43  ;;  %p1894_p2 = por %p1893_p13, %p1892_p12 }
 0x17c   : > { %1792 = vrcp.f32 %v723_v16  ;;  %v1777_v47 = vpop.eup %1776  ;;  %v1255_v20 = vadd.f32 %v3263_v5, %v1183_v7  ;;  %v725_v62 = vadd.f32 1.0, %v1775_v25  ;;  %v2934_v0 = vmul.f32 %v3262_v22, %v3264_v9  ;;  %v3269_v16 = vld [vmem:[#allocation66_spill] sm:$0xff] }
 0x17d   : > { %1794 = vrcp.f32 %v708_v35  ;;  %v1779_v42 = vpop.eup %1778  ;;  %v1240_v30 = vadd.f32 %v3265_v41, %v1168_v58  ;;  %v710_v40 = vadd.f32 1.0, %v1777_v47  ;;  %v2938_v39 = vsub.f32 %v3266_v45, %v910_v51  ;;  %v3270_v51 = vld [vmem:[#allocation17_spill] sm:$0xff]  ;;  %p1895_p0 = pnand %p1894_p2, %p1888_p9 }
 0x17e   : > { %1796 = vrcp.f32 %v724_v6  ;;  %v1781_v2 = vpop.eup %1780  ;;  %v1327_v60 = vadd.f32 %v3267_v48, %v1255_v20  ;;  %v726_v27 = vadd.f32 1.0, %v1779_v42  ;;  %v934_v23 = vadd.f32 0.5, %v2924_v50 }
 0x17f   : > { %1798 = vrcp.f32 %v709_v24  ;;  %v1783_v55 = vpop.eup %1782  ;;  %v1312_v12 = vadd.f32 %v3268_v56, %v1240_v30  ;;  %v711_v3 = vadd.f32 1.0, %v1781_v2  ;;  %v2945_v17 = vmul.f32 %v3251_v15, %v2846_v53 }
 0x180   : > { %1800 = vrcp.f32 %v725_v62  ;;  %1359 = vst [vmem:[%s2752_s9 + $0xb0] sm:$0xff] %v1327_v60  ;;  %v727_v21 = vadd.f32 1.0, %v1783_v55  ;;  %v2950_v61 = vmul.f32 %v3253_v52, %v3261_v43  ;;  %v2954_v14 = vmul.f32 %v3253_v52, %v3264_v9 }
 0x181   : > { %1802 = vrcp.f32 %v710_v40  ;;  %v1785_v1 = vpop.eup %1784  ;;  %1344 = vst [vmem:[%s2752_s9 + $0x38] sm:$0xff] %v1312_v12  ;;  %v1581_v28 = vmul.f32 -1.442695, %v3269_v16  ;;  %v2959_v53 = vadd.f32 0.5, %v2938_v39  ;;  %v2962_v8 = vmul.f32 %v3270_v51, %v934_v23 }
 0x182   : > { %1804 = vrcp.f32 %v726_v27  ;;  %v712_v32 = vadd.f32 1.0, %v1785_v1  ;;  %v1597_v7 = vmul.f32 -1.442695, %v2798_v33  ;;  %v2966_v25 = vmul.f32 -1.442695, %v2819_v57 }
 0x183   : > { %v1787_v34 = vpop.eup %1786  ;;  %1806 = vrcp.f32 %v711_v3  ;;  %v2969_v58 = vmul.f32 -1.442695, %v2829_v38 }
 0x184   : > { %v1789_v26 = vpop.eup %1788  ;;  %1808 = vrcp.f32 %v727_v21  ;;  %v728_v35 = vadd.f32 1.0, %v1787_v34 }
 0x185   : > { %v1791_v6 = vpop.eup %1790  ;;  %v1072_v44 = vmul.f32 %v1789_v26, %v1789_v26  ;;  %1810 = vrcp.f32 %v712_v32  ;;  %v1040_v43 = vmul.f32 %v1789_v26, %v2280_v18 }
 0x186   : > { %v1793_v24 = vpop.eup %1792  ;;  %v1025_v47 = vmul.f32 %v1791_v6, %v2269_v13  ;;  %v1057_v5 = vmul.f32 %v1791_v6, %v1791_v6  ;;  %1812 = vrcp.f32 %v728_v35  ;;  %v3271_v6 = vld [vmem:[#allocation34_spill] sm:$0xff] }
 0x187   : > { %v1795_v20 = vpop.eup %1794  ;;  %v1112_v62 = vmul.f32 %v2296_v37, %v1072_v44  ;;  %v1041_v33 = vmul.f32 %v1793_v24, %v2269_v13  ;;  %v1073_v9 = vmul.f32 %v1793_v24, %v1793_v24  ;;  %1814 = vpow2.f32 %v1581_v28 }
 0x188   : > { %v1797_v42 = vpop.eup %1796  ;;  %v1097_v57 = vmul.f32 %v2272_v63, %v1057_v5  ;;  %v1026_v38 = vmul.f32 %v1795_v20, %v2280_v18  ;;  %v1058_v41 = vmul.f32 %v1795_v20, %v1795_v20  ;;  %1816 = vpow2.f32 %v1597_v7  ;;  %v3272_v20 = vld [vmem:[#allocation36_spill] sm:$0xff] }
 0x189   : > { %v1799_v30 = vpop.eup %1798  ;;  %v1144_v40 = vadd.f32 %v1112_v62, %v1040_v43  ;;  %v1113_v45 = vmul.f32 %v2272_v63, %v1073_v9  ;;  %v1042_v2 = vmul.f32 %v1797_v42, %v2280_v18  ;;  %v1074_v48 = vmul.f32 %v1797_v42, %v1797_v42 }
 0x18a   : > { %v1801_v60 = vpop.eup %1800  ;;  %v1129_v27 = vadd.f32 %v1097_v57, %v1025_v47  ;;  %v1098_v23 = vmul.f32 %v2296_v37, %v1058_v41  ;;  %v1027_v55 = vmul.f32 %v1799_v30, %v2269_v13  ;;  %v1059_v56 = vmul.f32 %v1799_v30, %v1799_v30  ;;  %v3274_v30 = vld [vmem:[#allocation37_spill] sm:$0xff] }
 0x18b   : > { %v1803_v12 = vpop.eup %1802  ;;  %v1184_v3 = vadd.f32 %v2344_v29, %v1144_v40  ;;  %v1145_v1 = vadd.f32 %v1113_v45, %v1041_v33  ;;  %v1114_v21 = vmul.f32 %v2296_v37, %v1074_v48  ;;  %v1043_v34 = vmul.f32 %v1801_v60, %v2269_v13 }
 0x18c   : > { %v1805_v32 = vpop.eup %1804  ;;  %v1169_v16 = vadd.f32 %v2319_v54, %v1129_v27  ;;  %v1130_v28 = vadd.f32 %v1098_v23, %v1026_v38  ;;  %v1099_v26 = vmul.f32 %v2272_v63, %v1059_v56  ;;  %v1075_v35 = vmul.f32 %v1801_v60, %v1801_v60  ;;  %v3273_v38 = vld [vmem:[#allocation35_spill] sm:$0xff]  ;;  %v3275_v60 = vld [vmem:[#allocation42_spill] sm:$0xff] }
 0x18d   : > { %v1807_v7 = vpop.eup %1806  ;;  %v1256_v44 = vadd.f32 %v3271_v6, %v1184_v3  ;;  %v1185_v24 = vadd.f32 %v2319_v54, %v1145_v1  ;;  %v1146_v43 = vadd.f32 %v1114_v21, %v1042_v2  ;;  %v1028_v47 = vmul.f32 %v1803_v12, %v2280_v18  ;;  %v3276_v23 = vld [vmem:[#allocation39_spill] sm:$0xff] }
 0x18e   : > { %v1809_v5 = vpop.eup %1808  ;;  %v1241_v62 = vadd.f32 %v3272_v20, %v1169_v16  ;;  %v1170_v33 = vadd.f32 %v2344_v29, %v1130_v28  ;;  %v1131_v9 = vadd.f32 %v1099_v26, %v1027_v55  ;;  %v1115_v42 = vmul.f32 %v2272_v63, %v1075_v35  ;;  %v3277_v21 = vld [vmem:[#allocation43_spill] sm:$0xff]  ;;  %v3278_v28 = vld [vmem:[#allocation40_spill] sm:$0xff] }
 0x18f   : > { %v1811_v57 = vpop.eup %1810  ;;  %v1328_v41 = vadd.f32 %v3273_v38, %v1256_v44  ;;  %v1257_v40 = vadd.f32 %v3274_v30, %v1185_v24  ;;  %v1186_v45 = vadd.f32 %v2344_v29, %v1146_v43  ;;  %v1060_v2 = vmul.f32 %v1803_v12, %v1803_v12  ;;  %v3279_v44 = vld [vmem:[#allocation44_spill] sm:$0xff]  ;;  %v3280_v43 = vld [vmem:[#allocation47_spill] sm:$0xff] }
 0x190   : > { %v1813_v48 = vpop.eup %1812  ;;  %v1313_v27 = vadd.f32 %v3275_v60, %v1241_v62  ;;  %v1242_v56 = vadd.f32 %v3276_v23, %v1170_v33  ;;  %v1171_v3 = vadd.f32 %v2319_v54, %v1131_v9  ;;  %v1147_v55 = vadd.f32 %v1115_v42, %v1043_v34  ;;  %v3281_v33 = vld [vmem:[#allocation46_spill] sm:$0xff]  ;;  %v3282_v30 = vld [vmem:[#allocation51_spill] sm:$0xff] }
 0x191   : > { %v1815_v1 = vpop.eup %1814  ;;  %1360 = vst [vmem:[%s2752_s9 + $0xb8] sm:$0xff] %v1328_v41  ;;  %v1329_v16 = vadd.f32 %v3277_v21, %v1257_v40  ;;  %v1258_v26 = vadd.f32 %v3278_v28, %v1186_v45  ;;  %v1100_v35 = vmul.f32 %v2296_v37, %v1060_v2  ;;  %v1044_v12 = vmul.f32 %v1805_v32, %v2280_v18  ;;  %v3283_v45 = vld [vmem:[#allocation49_spill] sm:$0xff] }
 0x192   : > { %v1817_v6 = vpop.eup %1816  ;;  %1345 = vst [vmem:[%s2752_s9 + $0x40] sm:$0xff] %v1313_v27  ;;  %v1314_v24 = vadd.f32 %v3279_v44, %v1242_v56  ;;  %v1243_v20 = vadd.f32 %v3280_v43, %v1171_v3  ;;  %v1187_v34 = vadd.f32 %v2319_v54, %v1147_v55  ;;  %v1076_v62 = vmul.f32 %v1805_v32, %v1805_v32 }
 0x193   : > { %1361 = vst [vmem:[%s2752_s9 + $0xc0] sm:$0xff] %v1329_v16  ;;  %v1330_v9 = vadd.f32 %v3281_v33, %v1258_v26  ;;  %v1132_v42 = vadd.f32 %v1100_v35, %v1028_v47  ;;  %v1029_v38 = vmul.f32 %v1807_v7, %v2269_v13  ;;  %v1061_v41 = vmul.f32 %v1807_v7, %v1807_v7  ;;  %v3284_v7 = vld [vmem:[#allocation52_spill] sm:$0xff] }
 0x194   : > { %1346 = vst [vmem:[%s2752_s9 + $0x48] sm:$0xff] %v1314_v24  ;;  %v1315_v40 = vadd.f32 %v3282_v30, %v1243_v20  ;;  %v1259_v2 = vadd.f32 %v3283_v45, %v1187_v34  ;;  %v1116_v60 = vmul.f32 %v2296_v37, %v1076_v62  ;;  %v1045_v27 = vmul.f32 %v1809_v5, %v2269_v13  ;;  %v3285_v30 = vld [vmem:[#allocation16_spill] sm:$0xff] }
 0x195   : > { %1362 = vst [vmem:[%s2752_s9 + $0xc8] sm:$0xff] %v1330_v9  ;;  %v1172_v32 = vadd.f32 %v2344_v29, %v1132_v42  ;;  %v1101_v23 = vmul.f32 %v2272_v63, %v1061_v41  ;;  %v1077_v56 = vmul.f32 %v1809_v5, %v1809_v5  ;;  %v1030_v47 = vmul.f32 %v1811_v57, %v2280_v18 }
 0x196   : > { %1347 = vst [vmem:[%s2752_s9 + $0x50] sm:$0xff] %v1315_v40  ;;  %v1331_v3 = vadd.f32 %v3284_v7, %v1259_v2  ;;  %v1148_v55 = vadd.f32 %v1116_v60, %v1044_v12  ;;  %v1062_v21 = vmul.f32 %v1811_v57, %v1811_v57  ;;  %v1046_v16 = vmul.f32 %v1813_v48, %v2280_v18 }
 0x197   : > { %v1244_v28 = vadd.f32 %v2887_v11, %v1172_v32  ;;  %v1133_v26 = vadd.f32 %v1101_v23, %v1029_v38  ;;  %v1117_v35 = vmul.f32 %v2272_v63, %v1077_v56  ;;  %v1078_v44 = vmul.f32 %v1813_v48, %v1813_v48 }
 0x198   : > { %1363 = vst [vmem:[%s2752_s9 + $0xd0] sm:$0xff] %v1331_v3  ;;  %v1188_v24 = vadd.f32 %v2344_v29, %v1148_v55  ;;  %v1102_v5 = vmul.f32 %v2296_v37, %v1062_v21  ;;  %v713_v43 = vadd.f32 1.0, %v1815_v1  ;;  %v729_v20 = vadd.f32 1.0, %v1817_v6 }
 0x199   : > { %v1316_v34 = vadd.f32 %v2891_v10, %v1244_v28  ;;  %v1173_v57 = vadd.f32 %v2319_v54, %v1133_v26  ;;  %v1149_v12 = vadd.f32 %v1117_v35, %v1045_v27  ;;  %v1118_v62 = vmul.f32 %v2296_v37, %v1078_v44 }
 0x19a   : > { %v1260_v11 = vadd.f32 %v2896_v31, %v1188_v24  ;;  %v1134_v33 = vadd.f32 %v1102_v5, %v1030_v47  ;;  %1818 = vrcp.f32 %v713_v43  ;;  %v960_v48 = vmul.f32 %v3270_v51, %v2959_v53 }
 0x19b   : > { %1348 = vst [vmem:[%s2752_s9 + $0x58] sm:$0xff] %v1316_v34  ;;  %v1245_v1 = vadd.f32 %v2905_v59, %v1173_v57  ;;  %v1189_v6 = vadd.f32 %v2319_v54, %v1149_v12  ;;  %v1150_v10 = vadd.f32 %v1118_v62, %v1046_v16  ;;  %1820 = vrcp.f32 %v729_v20 }
 0x19c   : > { %v1332_v9 = vadd.f32 %v2900_v49, %v1260_v11  ;;  %v1174_v42 = vadd.f32 %v2344_v29, %v1134_v33  ;;  %v968_v31 = vfloor.f32 %v2962_v8  ;;  %1822 = vpow2.f32 %v2966_v25 }
 0x19d   : > { %v1317_v53 = vadd.f32 %v2929_v36, %v1245_v1  ;;  %v1261_v51 = vadd.f32 %v2909_v19, %v1189_v6  ;;  %v1190_v59 = vadd.f32 %v2344_v29, %v1150_v10  ;;  %1824 = vpow2.f32 %v2969_v58 }
 0x19e   : > { %1364 = vst [vmem:[%s2752_s9 + $0xd8] sm:$0xff] %v1332_v9  ;;  %v1246_v38 = vadd.f32 %v2919_v46, %v1174_v42  ;;  %v976_v49 = vfloor.f32 %v960_v48  ;;  %v984_v19 = vmul.f32 %v968_v31, %v3285_v30  ;;  %v1287_v21 = vmul.f32 %v3262_v22, %v968_v31 }
 0x19f   : > { %1349 = vst [vmem:[%s2752_s9 + $0x60] sm:$0xff] %v1317_v53  ;;  %v1333_v41 = vadd.f32 %v2934_v0, %v1261_v51  ;;  %v1262_v8 = vadd.f32 %v2945_v17, %v1190_v59  ;;  %v1288_v33 = vmul.f32 %v3253_v52, %v968_v31 }
 0x1a0   : > { %v1318_v25 = vadd.f32 %v2950_v61, %v1246_v38  ;;  %v992_v40 = vmul.f32 %v976_v49, %v3285_v30  ;;  %v1000_v46 = vsub.f32 %v2924_v50, %v984_v19 }
 0x1a1   : > { %1365 = vst [vmem:[%s2752_s9 + $0xe0] sm:$0xff] %v1333_v41  ;;  %v1334_v36 = vadd.f32 %v2954_v14, %v1262_v8 }
 0x1a2   : > { %1350 = vst [vmem:[%s2752_s9 + $0x68] sm:$0xff] %v1318_v25  ;;  %v1008_v0 = vsub.f32 %v2938_v39, %v992_v40  ;;  %v1215_v50 = vmul.f32 %v3258_v4, %v1000_v46  ;;  %v1216_v57 = vmul.f32 %v3251_v15, %v1000_v46 }
 0x1a3   : > { %1366 = vst [vmem:[%s2752_s9 + $0xe8] sm:$0xff] %v1334_v36 }
 0x1a4   : > { %v1819_v58 = vpop.eup %1818  ;;  %v1231_v39 = vmul.f32 %v3258_v4, %v1008_v0  ;;  %v1232_v62 = vmul.f32 %v3251_v15, %v1008_v0 }
 0x1a5   : > { %v1821_v45 = vpop.eup %1820  ;;  %v1063_v2 = vmul.f32 %v1819_v58, %v1819_v58  ;;  %v1031_v61 = vmul.f32 %v1819_v58, %v2269_v13 }
 0x1a6   : > { %v1823_v60 = vpop.eup %1822  ;;  %v1079_v17 = vmul.f32 %v1821_v45, %v1821_v45  ;;  %v1047_v23 = vmul.f32 %v1821_v45, %v2269_v13  ;;  %v1303_v13 = vmul.f32 %v3262_v22, %v976_v49 }
 0x1a7   : > { %v1825_v27 = vpop.eup %1824  ;;  %v1103_v14 = vmul.f32 %v2272_v63, %v1063_v2  ;;  %v714_v32 = vadd.f32 1.0, %v1823_v60 }
 0x1a8   : > { %v1119_v56 = vmul.f32 %v2272_v63, %v1079_v17  ;;  %v730_v47 = vadd.f32 1.0, %v1825_v27 }
 0x1a9   : > { %v1135_v7 = vadd.f32 %v1103_v14, %v1031_v61  ;;  %1826 = vrcp.f32 %v714_v32 }
 0x1aa   : > { %v1151_v3 = vadd.f32 %v1119_v56, %v1047_v23  ;;  %1828 = vrcp.f32 %v730_v47 }
 0x1ab   : > { %v1175_v55 = vadd.f32 %v2319_v54, %v1135_v7 }
 0x1ac   : > { %v1191_v16 = vadd.f32 %v2319_v54, %v1151_v3 }
 0x1ad   : > { %v1247_v63 = vadd.f32 %v1215_v50, %v1175_v55 }
 0x1ae   : > { %v1263_v28 = vadd.f32 %v1231_v39, %v1191_v16 }
 0x1af   : > { %v1319_v26 = vadd.f32 %v1287_v21, %v1247_v63 }
 0x1b0   : > { %v1335_v35 = vadd.f32 %v1303_v13, %v1263_v28 }
 0x1b1   : > { %1351 = vst [vmem:[%s2752_s9 + $0x70] sm:$0xff] %v1319_v26 }
 0x1b2   : > { %1367 = vst [vmem:[%s2752_s9 + $0xf0] sm:$0xff] %v1335_v35 }
 0x1b3   : > { %v1827_v44 = vpop.eup %1826 }
 0x1b4   : > { %v1829_v24 = vpop.eup %1828  ;;  %v1064_v5 = vmul.f32 %v1827_v44, %v1827_v44  ;;  %v1032_v43 = vmul.f32 %v1827_v44, %v2280_v18 }
 0x1b5   : > { %v1080_v4 = vmul.f32 %v1829_v24, %v1829_v24  ;;  %v1048_v54 = vmul.f32 %v1829_v24, %v2280_v18  ;;  %v1304_v18 = vmul.f32 %v3253_v52, %v976_v49 }
 0x1b6   : > { %v1104_v20 = vmul.f32 %v2296_v37, %v1064_v5 }
 0x1b7   : > { %v1120_v22 = vmul.f32 %v2296_v37, %v1080_v4 }
 0x1b8   : > { %v1136_v34 = vadd.f32 %v1104_v20, %v1032_v43 }
 0x1b9   : > { %v1152_v12 = vadd.f32 %v1120_v22, %v1048_v54 }
 0x1ba   : > { %v1176_v11 = vadd.f32 %v2344_v29, %v1136_v34 }
 0x1bb   : > { %v1192_v48 = vadd.f32 %v2344_v29, %v1152_v12 }
 0x1bc   : > { %v1248_v1 = vadd.f32 %v1216_v57, %v1176_v11 }
 0x1bd   : > { %v1264_v37 = vadd.f32 %v1232_v62, %v1192_v48 }
 0x1be   : > { %v1320_v6 = vadd.f32 %v1288_v33, %v1248_v1 }
 0x1bf   : > { %v1336_v10 = vadd.f32 %v1304_v18, %v1264_v37 }
 0x1c0   : > { %1352 = vst [vmem:[%s2752_s9 + $0x78] sm:$0xff] %v1320_v6 }
 0x1c1   : > { %1368 = vst [vmem:[%s2752_s9 + $0xf8] sm:$0xff] %v1336_v10 }
 0x1c2   : > { %1898 = shalt.err (!%p1895_p0)
}
 0x1c3   : > { %s1899_s9 = scalar_lea.hbm %s3086_s21, 4096  ;;  %s1903_s15 = scalar_lea.hbm %s3142_s6, 24576 }
 0x1c4   : > { %p1900_p1 = scmp.ne.s32.totalorder %s3086_s21, %s1899_s9  ;;  %p1904_p5 = scmp.lt.u32.totalorder %s3086_s21, %s3142_s6 }
 0x1c5   : > { %p1905_p6 = scmp.lt.u32.totalorder %s1903_s15, %s1899_s9  ;;  %p1907_p8 = scmp.lt.u32.totalorder %s1899_s9, %s3086_s21 }
 0x1c6   : > { %p1901_p3 = pnand %p1900_p1, %p2042_p10 }
 0x1c7   : > { %p1906_p7 = por %p1905_p6, %p1904_p5 }
 0x1c8   : > { %p1902_p4 = pneg %p1901_p3 }
 0x1c9   : > { %p1908_p9 = por %p1907_p8, %p1906_p7 }
 0x1cb   : > { %p1909_p12 = pnand %p1908_p9, %p1902_p4 }
 0x1cd   : > { %1912 = shalt.err (!%p1909_p12)
}
 0x1ce   : > { %1644 = dma.vmem_to_hbm [thread:$0]  (%p2042_p10), %s3088_s14, 4096, %s3086_s21, %s1375_s22, %s1963_s19, %s1963_s19, %s1964_s20  }
 0x1cf PF: > { %p1660_p13 = scmp.ge.s32.totalorder %s1957_s28, 2  ;;  %s1421_s18 = sand.u32 1, %s1945_s26  }
 0x1d0   : > { %s1422_s23 = scalar_lea.sflag [#allocation5], %s1421_s18 }
 0x1d1   : > { %p1652_p2 = pnand %p1660_p13, %p2046_p11 }
 0x1d3   : > { %1936 = dma.done.wait (!%p1652_p2), %s1422_s23, 4096  }
 0x1d4   : > { %1938 = vsyncadd (!%p1652_p2), %s1422_s23, 4294963200  ;;  %s1431_s11 = scalar_lea.sflag [#allocation9], %s1421_s18 }
 0x1d5   : > { %1940 = dma.done.wait (!%p1652_p2), %s1431_s11, 4096  }
 0x1d6   : > { %1942 = vsyncadd (!%p1652_p2), %s1431_s11, 4294963200  ;;  %p27_p10 = scmp.ge.s32.totalorder %s2029_s7, 8   ;;  %s3286_s26 = smov %s1949_s0 }
 0x1d7   : > { %s3287_s0 = smov %s1953_s27  ;;  %s3288_s27 = smov %s2040_s10 }
 0x1d8   : > { %s3289_s28 = smov %s2029_s7  ;;  %29 = sbr.rel (!%p27_p10) target bundleno = 21 (0x15), region = 99 }
 0x1df   :  { %1436 = vsyncpa [#allocation5], 1 }
 0x1e0   :  { %1438 = vsyncpa [#allocation5 + $0x1], 1 }
 0x1e1   :  { %1439 = vsyncpa [#allocation9], 1 }
 0x1e2   :  { %1441 = vsyncpa [#allocation9 + $0x1], 1 }
 0x1e3   :  { %1442 = vsyncpa [#allocation6], 1 }
 0x1e4   :  { %1444 = vsyncpa [#allocation6 + $0x1], 1 }

</bundles_post_ra>
